<compile_context>
chip_gen: v6e
topology: v6e:2x2x1
jax: 0.10.0
libtpu: 0.0.40
codegen_flags: <defaults>
</compile_context>

<pallas_src>
import jax
import jax.numpy as jnp
from jax.experimental import pallas as pl
from jax.experimental.pallas import tpu as pltpu

_LANE = 128
_MAX_TILE_M = 16384      # MLP lane-tile cap: ~11 MiB/step, fits v5e/v6e/v7x
_MAX_TILE_P = 2048       # conv pixel-tile cap


# ----------------------------------------------------------------------------
# Hardware-aware tiling helpers
# ----------------------------------------------------------------------------
def _num_tensorcores():
    """Best-effort TensorCores-per-chip (v7x: 2, v5e/v6e: 1). Falls back to 1."""
    try:
        info = pltpu.get_tpu_info()
        for attr in ("tensorcores_per_chip", "num_tensorcores", "num_cores",
                     "cores_per_chip"):
            v = getattr(info, attr, None)
            if isinstance(v, int) and v > 0:
                return v
    except Exception:
        pass
    try:
        kind = jax.devices()[0].device_kind.lower()
        if "v7" in kind or "tpu7" in kind:
            return 2
    except Exception:
        pass
    return 1


def _mlp_tile_m(m, n_cores, max_tile_m=_MAX_TILE_M):
    """Pick the lane-tile size for the MLP kernel."""
    m_lane = pl.cdiv(m, _LANE) * _LANE
    # Fewest, largest tiles that respect the VMEM budget (best for 1-TC chips:
    # no pointless splits, no extra per-step overhead).
    n_tiles = pl.cdiv(m_lane, max_tile_m)
    if n_cores > 1 and m_lane >= 2 * n_cores * 4 * _LANE:
        # v7x: >= 2 grid steps per TensorCore so DMA/compute overlap on both
        # cores, and an even step count so the cores stay load-balanced.
        n_tiles = max(n_tiles, 2 * n_cores)
        if n_tiles % 2:
            n_tiles += 1
    tile_m = pl.cdiv(pl.cdiv(m_lane, n_tiles), _LANE) * _LANE
    return max(_LANE, min(tile_m, max_tile_m))


# ----------------------------------------------------------------------------
# Pallas kernels
# ----------------------------------------------------------------------------
def _leaky_relu(v, slope=0.2):
    return jnp.where(v >= 0, v, slope * v)


def mlp_kernel(x_ref, n_ref, w1, b1, w2, b2, w3, b3, w4, b4, o_ref):
    """4-layer MLP (Linear + LeakyReLU(0.2) x3, Linear), channel-major, bf16 MXU.

    x_ref: (n_ch, tile_m) f32   -- M on the lane axis (lane-dense)
    n_ref: (n_ch, tile_m) bf16  -- noise, fused add (no HBM temp for Hx+noise)
    wN:    (out, in) bf16       -- native PyTorch layout, VMEM-resident
    bN:    (out, 1)  f32        -- added after f32 accumulation
    """
    xb = (x_ref[...] + n_ref[...].astype(jnp.float32)).astype(jnp.bfloat16)
    z = jnp.dot(w1[...], xb, preferred_element_type=jnp.float32) + b1[...]
    z = _leaky_relu(z).astype(jnp.bfloat16)
    z = jnp.dot(w2[...], z, preferred_element_type=jnp.float32) + b2[...]
    z = _leaky_relu(z).astype(jnp.bfloat16)
    z = jnp.dot(w3[...], z, preferred_element_type=jnp.float32) + b3[...]
    z = _leaky_relu(z).astype(jnp.bfloat16)
    z = jnp.dot(w4[...], z, preferred_element_type=jnp.float32) + b4[...]
    o_ref[...] = z.astype(o_ref.dtype)


def conv1x1_sigmoid_kernel(w_ref, b_ref, x_ref, o_ref):
    """1x1 conv (pointwise channel mix) + sigmoid: sigmoid(W @ X + b).

    Tiny K=N3 contraction; kept on the MXU (cost is negligible either way).
    Sigmoid denominator via EUP approx reciprocal (exp already sits on EUP).
    """
    y = jnp.dot(w_ref[...], x_ref[...], preferred_element_type=jnp.float32) + b_ref[...]
    o_ref[...] = pl.reciprocal(1.0 + jnp.exp(-y), approx=True).astype(o_ref.dtype)


# ----------------------------------------------------------------------------
# Pallas wrappers
# ----------------------------------------------------------------------------
def mlp_pallas(x_cm, noise_cm, w1, b1, w2, b2, w3, b3, w4, b4):
    """x_cm: (n_ch, M) f32; noise_cm: (n_ch, M); weights (out, in) -> (n_ch, M) f32."""
    nch, m = x_cm.shape
    r0, r1, r2 = w1.shape[0], w2.shape[0], w3.shape[0]

    noise_cm = noise_cm.astype(jnp.bfloat16)          # no-op if already bf16
    w1b, w2b = w1.astype(jnp.bfloat16), w2.astype(jnp.bfloat16)
    w3b, w4b = w3.astype(jnp.bfloat16), w4.astype(jnp.bfloat16)

    tile_m = _mlp_tile_m(m, _num_tensorcores())
    n_tiles = pl.cdiv(m, tile_m)                      # ragged last tile allowed

    def resident(shape):
        # whole array, same block every grid step -> stays resident in VMEM
        return pl.BlockSpec(shape, lambda i: (0, 0))

    flops = 2 * m * (nch * r0 + r0 * r1 + r1 * r2 + r2 * nch)
    bytes_accessed = (4 * m * nch            # x f32 in
                      + 2 * m * nch          # noise bf16 in
                      + 4 * m * nch          # out f32
                      + 2 * (nch * r0 + r0 * r1 + r1 * r2 + r2 * nch)
                      + 4 * (r0 + r1 + r2 + nch))

    return pl.pallas_call(
        mlp_kernel,
        out_shape=jax.ShapeDtypeStruct((nch, m), jnp.float32),
        grid=(n_tiles,),
        in_specs=[
            pl.BlockSpec((nch, tile_m), lambda i: (0, i)),   # x
            pl.BlockSpec((nch, tile_m), lambda i: (0, i)),   # noise
            resident((r0, nch)), resident((r0, 1)),
            resident((r1, r0)), resident((r1, 1)),
            resident((r2, r1)), resident((r2, 1)),
            resident((nch, r2)), resident((nch, 1)),
        ],
        out_specs=pl.BlockSpec((nch, tile_m), lambda i: (0, i)),
        compiler_params=pltpu.CompilerParams(
            dimension_semantics=("parallel",),
            vmem_limit_bytes=32 * 1024 * 1024),
        cost_estimate=pl.CostEstimate(flops=flops, transcendentals=0,
                                      bytes_accessed=bytes_accessed),
    )(x_cm, noise_cm,
      w1b, b1.reshape(-1, 1), w2b, b2.reshape(-1, 1),
      w3b, b3.reshape(-1, 1), w4b, b4.reshape(-1, 1))


def conv1x1_sigmoid_pallas(x_cm, conv_w, conv_b):
    """x_cm: (N3, N1*N2); conv_w: (N3, N3, 1, 1); conv_b: (N3,) -> (N3, N1*N2)."""
    n3, p = x_cm.shape
    # Lane-align the pixel axis so stores are full-width vst (no vst.msk); the
    # pad is tiny relative to the MLP stage (N3 x N1*N2 only).
    tile_p = min(_MAX_TILE_P, pl.cdiv(p, _LANE) * _LANE)
    p_pad = pl.cdiv(p, tile_p) * tile_p
    if p_pad != p:
        x_cm = jnp.pad(x_cm, ((0, 0), (0, p_pad - p)))
    grid = p_pad // tile_p

    out = pl.pallas_call(
        conv1x1_sigmoid_kernel,
        out_shape=jax.ShapeDtypeStruct((n3, p_pad), jnp.float32),
        grid=(grid,),
        in_specs=[
            pl.BlockSpec((n3, n3), lambda i: (0, 0)),        # W resident
            pl.BlockSpec((n3, 1), lambda i: (0, 0)),         # b resident
            pl.BlockSpec((n3, tile_p), lambda i: (0, i)),    # pixels tiled
        ],
        out_specs=pl.BlockSpec((n3, tile_p), lambda i: (0, i)),
        compiler_params=pltpu.CompilerParams(dimension_semantics=("parallel",)),
    )(conv_w.reshape(n3, n3), conv_b.reshape(n3, 1), x_cm)
    return out[:, :p]


# ----------------------------------------------------------------------------
# H / Hinv delay-embedding glue (plain JAX, channel-major: pure data movement)
# ----------------------------------------------------------------------------
def H_cm(x, tau):
    """x: (N3, 1, N1, N2) -> (tau*tau, N3, Ho, Wo), Unfold with pad=tau-1."""
    n3, _, n1, n2 = x.shape
    p = tau - 1
    xp = jnp.pad(x[:, 0], ((0, 0), (p, p), (p, p)))
    ho, wo = n1 + p, n2 + p
    patches = [xp[:, ki:ki + ho, kj:kj + wo]
               for ki in range(tau) for kj in range(tau)]
    return jnp.stack(patches, axis=0)                        # (K, N3, Ho, Wo)


def Hinv_cm(z, tau):
    """z: (tau*tau, N3, Ho, Wo) -> (N3, N1, N2); Fold + overlap normalization.

    On the cropped interior every pixel receives exactly tau*tau overlapping
    contributions, so the fold reduces to a sum of shifted planes / tau^2.
    """
    k, n3, ho, wo = z.shape
    p = tau - 1
    n1, n2 = ho - p, wo - p
    acc = jnp.zeros((n3, n1, n2), z.dtype)
    idx = 0
    for ki in range(tau):
        for kj in range(tau):
            acc = acc + z[idx, :, p - ki:p - ki + n1, p - kj:p - kj + n2]
            idx += 1
    return acc / float(tau * tau)


# ----------------------------------------------------------------------------
# mmes forward
# ----------------------------------------------------------------------------
def mmes_forward(params, noise, tau, shape):
    n1, n2, n3 = shape
    ho, wo = n1 + tau - 1, n2 + tau - 1
    k = tau * tau
    x = params["x"]                                          # (N3, 1, N1, N2)

    hx_cm = H_cm(x, tau).reshape(k, n3 * ho * wo)            # (K, M) channel-major f32
    Hx = hx_cm.T                                             # (M, K) module output

    # channel-major bf16 noise: one fused XLA transpose+cast; the add itself
    # happens inside the Pallas kernel (no materialized Hx+noise temp in HBM).
    noise_cm = noise.astype(jnp.bfloat16).T                  # (K, M) bf16

    ahx_cm = mlp_pallas(
        hx_cm, noise_cm,
        params["w1"], params["b1"], params["w2"], params["b2"],
        params["w3"], params["b3"], params["w4"], params["b4"],
    )                                                        # (K, M) f32
    AHx = ahx_cm.T                                           # (M, K) module output

    z4 = ahx_cm.reshape(k, n3, ho, wo)
    xrec = Hinv_cm(z4, tau)                                  # (N3, N1, N2)
    y_cm = conv1x1_sigmoid_pallas(xrec.reshape(n3, n1 * n2),
                                  params["conv_w"], params["conv_b"])
    Y = y_cm.reshape(n3, 1, n1, n2)                          # (N3, 1, N1, N2)
    return Hx, AHx, Y


# ----------------------------------------------------------------------------
# Parameter init (deterministic, mimics PyTorch uniform(-1/sqrt(fan_in), ...))
# ----------------------------------------------------------------------------
def init_params(key, x, n_channels, ranks, n3):
    ks = jax.random.split(key, 10)

    def linear(kw, kb, fan_in, fan_out):
        bound = 1.0 / float(fan_in) ** 0.5
        w = jax.random.uniform(kw, (fan_out, fan_in), jnp.float32, -bound, bound)
        b = jax.random.uniform(kb, (fan_out,), jnp.float32, -bound, bound)
        return w, b

    w1, b1 = linear(ks[0], ks[1], n_channels, ranks[0])
    w2, b2 = linear(ks[2], ks[3], ranks[0], ranks[1])
    w3, b3 = linear(ks[4], ks[5], ranks[1], ranks[2])
    w4, b4 = linear(ks[6], ks[7], ranks[2], n_channels)
    cb = 1.0 / float(n3) ** 0.5
    conv_w = jax.random.uniform(ks[8], (n3, n3, 1, 1), jnp.float32, -cb, cb)
    conv_b = jax.random.uniform(ks[9], (n3,), jnp.float32, -cb, cb)
    return dict(x=x, w1=w1, b1=b1, w2=w2, b2=b2, w3=w3, b3=b3, w4=w4, b4=b4,
                conv_w=conv_w, conv_b=conv_b)


# ----------------------------------------------------------------------------
# Pure-JAX reference (mirrors the kernel's bf16-input / f32-accumulate recipe
# so the check validates the Pallas plumbing rather than the precision choice)
# ----------------------------------------------------------------------------
def _reference(params, noise, tau, shape):
    n1, n2, n3 = shape
    ho, wo = n1 + tau - 1, n2 + tau - 1
    k = tau * tau
    hx_cm = H_cm(params["x"], tau).reshape(k, n3 * ho * wo)
    Hx = hx_cm.T

    bf16, f32 = jnp.bfloat16, jnp.float32

    def lrelu(v):
        return jnp.where(v >= 0, v, 0.2 * v)

    def lin(z_b, w, b):
        return jnp.dot(z_b, w.astype(bf16).T, preferred_element_type=f32) + b

    xb = (Hx + noise.astype(bf16).astype(f32)).astype(bf16)
    z = lrelu(lin(xb, params["w1"], params["b1"])).astype(bf16)
    z = lrelu(lin(z, params["w2"], params["b2"])).astype(bf16)
    z = lrelu(lin(z, params["w3"], params["b3"])).astype(bf16)
    AHx = lin(z, params["w4"], params["b4"])

    z4 = AHx.T.reshape(k, n3, ho, wo)
    xrec = Hinv_cm(z4, tau)                                  # (N3, N1, N2)
    w = params["conv_w"].reshape(n3, n3)
    y = jnp.einsum("oc,cij->oij", w, xrec,
                   precision=jax.lax.Precision.HIGHEST) + params["conv_b"][:, None, None]
    Y = jax.nn.sigmoid(y)[:, None]
    return Hx, AHx, Y


# ----------------------------------------------------------------------------
if __name__ == "__main__":
    key = jax.random.PRNGKey(0)
    # small shapes: image 13x13x4, tau=4 -> n_channels = 16, M = 4*16*16 = 1024
    N1, N2, N3 = 13, 13, 4
    tau = 4
    shape = (N1, N2, N3)
    n_channels = tau * tau
    ranks = (32, 16, 32)

    kx, kn, kp = jax.random.split(key, 3)
    x_param = jax.random.normal(kx, (N3, 1, N1, N2), jnp.float32)
    params = init_params(kp, x_param, n_channels, ranks, N3)

    M = N3 * (N1 + tau - 1) * (N2 + tau - 1)
    noise = 0.1 * jax.random.normal(kn, (M, n_channels), jnp.float32)

    fwd = jax.jit(mmes_forward, static_argnums=(2, 3))
    Hx, AHx, Y = fwd(params, noise, tau, shape)
    jax.block_until_ready((Hx, AHx, Y))

    # sanity check against precision-matched pure-JAX reference
    Hx_r, AHx_r, Y_r = _reference(params, noise, tau, shape)
    assert Hx.shape == (M, n_channels) and AHx.shape == (M, n_channels)
    assert Y.shape == (N3, 1, N1, N2)
    assert jnp.max(jnp.abs(Hx - Hx_r)) < 1e-5
    assert jnp.max(jnp.abs(AHx - AHx_r)) < 2e-3
    assert jnp.max(jnp.abs(Y - Y_r)) < 2e-3

    print("KERNEL_OK")
</pallas_src>

<mosaic_0001>
module attributes {stable_mosaic.version = 11 : i64} {
  func.func @mlp_kernel(%arg0: i32, %arg1: memref<16x1024xf32, #tpu.memory_space<vmem>>, %arg2: memref<16x1024xbf16, #tpu.memory_space<vmem>>, %arg3: memref<32x16xbf16, #tpu.memory_space<vmem>>, %arg4: memref<32x1xf32, #tpu.memory_space<vmem>>, %arg5: memref<16x32xbf16, #tpu.memory_space<vmem>>, %arg6: memref<16x1xf32, #tpu.memory_space<vmem>>, %arg7: memref<32x16xbf16, #tpu.memory_space<vmem>>, %arg8: memref<32x1xf32, #tpu.memory_space<vmem>>, %arg9: memref<16x32xbf16, #tpu.memory_space<vmem>>, %arg10: memref<16x1xf32, #tpu.memory_space<vmem>>, %arg11: memref<16x1024xf32, #tpu.memory_space<vmem>>) attributes {dimension_semantics = [#tpu.dimension_semantics<parallel>], iteration_bounds = array<i64: 1>, scalar_prefetch = 0 : i64, scratch_operands = 0 : i64, tpu.core_type = #tpu.core_type<tc>, window_params = [{transform_indices = @transform_0, window_bounds = array<i64: 16, 1024>}, {transform_indices = @transform_1, window_bounds = array<i64: 16, 1024>}, {pipeline_mode = #tpu.pipeline_mode<synchronous>, transform_indices = @transform_2, window_bounds = array<i64: 32, 16>}, {pipeline_mode = #tpu.pipeline_mode<synchronous>, transform_indices = @transform_3, window_bounds = array<i64: 32, 1>}, {pipeline_mode = #tpu.pipeline_mode<synchronous>, transform_indices = @transform_4, window_bounds = array<i64: 16, 32>}, {pipeline_mode = #tpu.pipeline_mode<synchronous>, transform_indices = @transform_5, window_bounds = array<i64: 16, 1>}, {pipeline_mode = #tpu.pipeline_mode<synchronous>, transform_indices = @transform_6, window_bounds = array<i64: 32, 16>}, {pipeline_mode = #tpu.pipeline_mode<synchronous>, transform_indices = @transform_7, window_bounds = array<i64: 32, 1>}, {pipeline_mode = #tpu.pipeline_mode<synchronous>, transform_indices = @transform_8, window_bounds = array<i64: 16, 32>}, {pipeline_mode = #tpu.pipeline_mode<synchronous>, transform_indices = @transform_9, window_bounds = array<i64: 16, 1>}, {transform_indices = @transform_10, window_bounds = array<i64: 16, 1024>}]} {
    %c0 = arith.constant 0 : index
    %c0_0 = arith.constant 0 : index
    %0 = vector.load %arg1[%c0, %c0_0] : memref<16x1024xf32, #tpu.memory_space<vmem>>, vector<16x1024xf32>
    %c0_1 = arith.constant 0 : index
    %c0_2 = arith.constant 0 : index
    %1 = vector.load %arg2[%c0_1, %c0_2] : memref<16x1024xbf16, #tpu.memory_space<vmem>>, vector<16x1024xbf16>
    %2 = arith.extf %1 : vector<16x1024xbf16> to vector<16x1024xf32>
    %3 = arith.addf %0, %2 : vector<16x1024xf32>
    %4 = arith.truncf %3 : vector<16x1024xf32> to vector<16x1024xbf16>
    %c0_3 = arith.constant 0 : index
    %c0_4 = arith.constant 0 : index
    %5 = vector.load %arg3[%c0_3, %c0_4] : memref<32x16xbf16, #tpu.memory_space<vmem>>, vector<32x16xbf16>
    %cst = arith.constant dense<0.000000e+00> : vector<32x1024xf32>
    %6 = tpu.matmul %5, %4, %cst {dimension_numbers = #tpu.dot_dimension_numbers<[1], [0], [0], [1], [0, 0, 1, 1], [], []>} : vector<32x16xbf16>, vector<16x1024xbf16>, vector<32x1024xf32> -> vector<32x1024xf32>
    %c0_5 = arith.constant 0 : index
    %c0_6 = arith.constant 0 : index
    %7 = vector.load %arg4[%c0_5, %c0_6] : memref<32x1xf32, #tpu.memory_space<vmem>>, vector<32x1xf32>
    %8 = vector.broadcast %7 : vector<32x1xf32> to vector<32x1024xf32>
    %9 = arith.addf %6, %8 : vector<32x1024xf32>
    %cst_7 = arith.constant 0.000000e+00 : f32
    %10 = vector.broadcast %cst_7 : f32 to vector<32x1024xf32>
    %11 = arith.cmpf oge, %9, %10 : vector<32x1024xf32>
    %cst_8 = arith.constant 2.000000e-01 : f32
    %12 = vector.broadcast %cst_8 : f32 to vector<32x1024xf32>
    %13 = arith.mulf %12, %9 : vector<32x1024xf32>
    %14 = arith.select %11, %9, %13 : vector<32x1024xi1>, vector<32x1024xf32>
    %15 = arith.truncf %14 : vector<32x1024xf32> to vector<32x1024xbf16>
    %c0_9 = arith.constant 0 : index
    %c0_10 = arith.constant 0 : index
    %16 = vector.load %arg5[%c0_9, %c0_10] : memref<16x32xbf16, #tpu.memory_space<vmem>>, vector<16x32xbf16>
    %cst_11 = arith.constant dense<0.000000e+00> : vector<16x1024xf32>
    %17 = tpu.matmul %16, %15, %cst_11 {dimension_numbers = #tpu.dot_dimension_numbers<[1], [0], [0], [1], [0, 0, 1, 1], [], []>} : vector<16x32xbf16>, vector<32x1024xbf16>, vector<16x1024xf32> -> vector<16x1024xf32>
    %c0_12 = arith.constant 0 : index
    %c0_13 = arith.constant 0 : index
    %18 = vector.load %arg6[%c0_12, %c0_13] : memref<16x1xf32, #tpu.memory_space<vmem>>, vector<16x1xf32>
    %19 = vector.broadcast %18 : vector<16x1xf32> to vector<16x1024xf32>
    %20 = arith.addf %17, %19 : vector<16x1024xf32>
    %cst_14 = arith.constant 0.000000e+00 : f32
    %21 = vector.broadcast %cst_14 : f32 to vector<16x1024xf32>
    %22 = arith.cmpf oge, %20, %21 : vector<16x1024xf32>
    %cst_15 = arith.constant 2.000000e-01 : f32
    %23 = vector.broadcast %cst_15 : f32 to vector<16x1024xf32>
    %24 = arith.mulf %23, %20 : vector<16x1024xf32>
    %25 = arith.select %22, %20, %24 : vector<16x1024xi1>, vector<16x1024xf32>
    %26 = arith.truncf %25 : vector<16x1024xf32> to vector<16x1024xbf16>
    %c0_16 = arith.constant 0 : index
    %c0_17 = arith.constant 0 : index
    %27 = vector.load %arg7[%c0_16, %c0_17] : memref<32x16xbf16, #tpu.memory_space<vmem>>, vector<32x16xbf16>
    %cst_18 = arith.constant dense<0.000000e+00> : vector<32x1024xf32>
    %28 = tpu.matmul %27, %26, %cst_18 {dimension_numbers = #tpu.dot_dimension_numbers<[1], [0], [0], [1], [0, 0, 1, 1], [], []>} : vector<32x16xbf16>, vector<16x1024xbf16>, vector<32x1024xf32> -> vector<32x1024xf32>
    %c0_19 = arith.constant 0 : index
    %c0_20 = arith.constant 0 : index
    %29 = vector.load %arg8[%c0_19, %c0_20] : memref<32x1xf32, #tpu.memory_space<vmem>>, vector<32x1xf32>
    %30 = vector.broadcast %29 : vector<32x1xf32> to vector<32x1024xf32>
    %31 = arith.addf %28, %30 : vector<32x1024xf32>
    %cst_21 = arith.constant 0.000000e+00 : f32
    %32 = vector.broadcast %cst_21 : f32 to vector<32x1024xf32>
    %33 = arith.cmpf oge, %31, %32 : vector<32x1024xf32>
    %cst_22 = arith.constant 2.000000e-01 : f32
    %34 = vector.broadcast %cst_22 : f32 to vector<32x1024xf32>
    %35 = arith.mulf %34, %31 : vector<32x1024xf32>
    %36 = arith.select %33, %31, %35 : vector<32x1024xi1>, vector<32x1024xf32>
    %37 = arith.truncf %36 : vector<32x1024xf32> to vector<32x1024xbf16>
    %c0_23 = arith.constant 0 : index
    %c0_24 = arith.constant 0 : index
    %38 = vector.load %arg9[%c0_23, %c0_24] : memref<16x32xbf16, #tpu.memory_space<vmem>>, vector<16x32xbf16>
    %cst_25 = arith.constant dense<0.000000e+00> : vector<16x1024xf32>
    %39 = tpu.matmul %38, %37, %cst_25 {dimension_numbers = #tpu.dot_dimension_numbers<[1], [0], [0], [1], [0, 0, 1, 1], [], []>} : vector<16x32xbf16>, vector<32x1024xbf16>, vector<16x1024xf32> -> vector<16x1024xf32>
    %c0_26 = arith.constant 0 : index
    %c0_27 = arith.constant 0 : index
    %40 = vector.load %arg10[%c0_26, %c0_27] : memref<16x1xf32, #tpu.memory_space<vmem>>, vector<16x1xf32>
    %41 = vector.broadcast %40 : vector<16x1xf32> to vector<16x1024xf32>
    %42 = arith.addf %39, %41 : vector<16x1024xf32>
    %c0_28 = arith.constant 0 : index
    %c0_29 = arith.constant 0 : index
    %43 = vector.load %arg11[%c0_28, %c0_29] : memref<16x1024xf32, #tpu.memory_space<vmem>>, vector<16x1024xf32>
    tpu.vector_store %arg11[%c0_28, %c0_29], %42 {strides = array<i32>} : memref<16x1024xf32, #tpu.memory_space<vmem>>, vector<16x1024xf32>,
    return
  }
  func.func @transform_0(%arg0: i32) -> (i32, i32) {
    %c0_i32 = arith.constant 0 : i32
    %c0_i32_0 = arith.constant 0 : i32
    return %c0_i32, %arg0 : i32, i32
  }
  func.func @transform_1(%arg0: i32) -> (i32, i32) {
    %c0_i32 = arith.constant 0 : i32
    %c0_i32_0 = arith.constant 0 : i32
    return %c0_i32, %arg0 : i32, i32
  }
  func.func @transform_2(%arg0: i32) -> (i32, i32) {
    %c0_i32 = arith.constant 0 : i32
    %c0_i32_0 = arith.constant 0 : i32
    %c0_i32_1 = arith.constant 0 : i32
    return %c0_i32, %c0_i32_0 : i32, i32
  }
  func.func @transform_3(%arg0: i32) -> (i32, i32) {
    %c0_i32 = arith.constant 0 : i32
    %c0_i32_0 = arith.constant 0 : i32
    %c0_i32_1 = arith.constant 0 : i32
    return %c0_i32, %c0_i32_0 : i32, i32
  }
  func.func @transform_4(%arg0: i32) -> (i32, i32) {
    %c0_i32 = arith.constant 0 : i32
    %c0_i32_0 = arith.constant 0 : i32
    %c0_i32_1 = arith.constant 0 : i32
    return %c0_i32, %c0_i32_0 : i32, i32
  }
  func.func @transform_5(%arg0: i32) -> (i32, i32) {
    %c0_i32 = arith.constant 0 : i32
    %c0_i32_0 = arith.constant 0 : i32
    %c0_i32_1 = arith.constant 0 : i32
    return %c0_i32, %c0_i32_0 : i32, i32
  }
  func.func @transform_6(%arg0: i32) -> (i32, i32) {
    %c0_i32 = arith.constant 0 : i32
    %c0_i32_0 = arith.constant 0 : i32
    %c0_i32_1 = arith.constant 0 : i32
    return %c0_i32, %c0_i32_0 : i32, i32
  }
  func.func @transform_7(%arg0: i32) -> (i32, i32) {
    %c0_i32 = arith.constant 0 : i32
    %c0_i32_0 = arith.constant 0 : i32
    %c0_i32_1 = arith.constant 0 : i32
    return %c0_i32, %c0_i32_0 : i32, i32
  }
  func.func @transform_8(%arg0: i32) -> (i32, i32) {
    %c0_i32 = arith.constant 0 : i32
    %c0_i32_0 = arith.constant 0 : i32
    %c0_i32_1 = arith.constant 0 : i32
    return %c0_i32, %c0_i32_0 : i32, i32
  }
  func.func @transform_9(%arg0: i32) -> (i32, i32) {
    %c0_i32 = arith.constant 0 : i32
    %c0_i32_0 = arith.constant 0 : i32
    %c0_i32_1 = arith.constant 0 : i32
    return %c0_i32, %c0_i32_0 : i32, i32
  }
  func.func @transform_10(%arg0: i32) -> (i32, i32) {
    %c0_i32 = arith.constant 0 : i32
    %c0_i32_0 = arith.constant 0 : i32
    return %c0_i32, %arg0 : i32, i32
  }
}

module attributes {stable_mosaic.version = 11 : i64} {
  func.func @conv1x1_sigmoid_kernel(%arg0: i32, %arg1: memref<4x4xf32, #tpu.memory_space<vmem>>, %arg2: memref<4x1xf32, #tpu.memory_space<vmem>>, %arg3: memref<4x256xf32, #tpu.memory_space<vmem>>, %arg4: memref<4x256xf32, #tpu.memory_space<vmem>>) attributes {dimension_semantics = [#tpu.dimension_semantics<parallel>], iteration_bounds = array<i64: 1>, scalar_prefetch = 0 : i64, scratch_operands = 0 : i64, tpu.core_type = #tpu.core_type<tc>, window_params = [{pipeline_mode = #tpu.pipeline_mode<synchronous>, transform_indices = @transform_0, window_bounds = array<i64: 4, 4>}, {pipeline_mode = #tpu.pipeline_mode<synchronous>, transform_indices = @transform_1, window_bounds = array<i64: 4, 1>}, {transform_indices = @transform_2, window_bounds = array<i64: 4, 256>}, {transform_indices = @transform_3, window_bounds = array<i64: 4, 256>}]} {
    %c0 = arith.constant 0 : index
    %c0_0 = arith.constant 0 : index
    %0 = vector.load %arg1[%c0, %c0_0] : memref<4x4xf32, #tpu.memory_space<vmem>>, vector<4x4xf32>
    %c0_1 = arith.constant 0 : index
    %c0_2 = arith.constant 0 : index
    %1 = vector.load %arg3[%c0_1, %c0_2] : memref<4x256xf32, #tpu.memory_space<vmem>>, vector<4x256xf32>
    %cst = arith.constant dense<0.000000e+00> : vector<4x256xf32>
    %2 = tpu.matmul %0, %1, %cst {dimension_numbers = #tpu.dot_dimension_numbers<[1], [0], [0], [1], [0, 0, 1, 1], [], []>} : vector<4x4xf32>, vector<4x256xf32>, vector<4x256xf32> -> vector<4x256xf32>
    %c0_3 = arith.constant 0 : index
    %c0_4 = arith.constant 0 : index
    %3 = vector.load %arg2[%c0_3, %c0_4] : memref<4x1xf32, #tpu.memory_space<vmem>>, vector<4x1xf32>
    %4 = vector.broadcast %3 : vector<4x1xf32> to vector<4x256xf32>
    %5 = arith.addf %2, %4 : vector<4x256xf32>
    %cst_5 = arith.constant 0.000000e+00 : f32
    %6 = vector.broadcast %cst_5 : f32 to vector<4x256xf32>
    %7 = arith.subf %6, %5 : vector<4x256xf32>
    %8 = math.exp %7 : vector<4x256xf32>
    %cst_6 = arith.constant 1.000000e+00 : f32
    %9 = vector.broadcast %cst_6 : f32 to vector<4x256xf32>
    %10 = arith.addf %9, %8 : vector<4x256xf32>
    %11 = tpu.reciprocal %10 {approx = true} : vector<4x256xf32> -> vector<4x256xf32>
    %c0_7 = arith.constant 0 : index
    %c0_8 = arith.constant 0 : index
    %12 = vector.load %arg4[%c0_7, %c0_8] : memref<4x256xf32, #tpu.memory_space<vmem>>, vector<4x256xf32>
    tpu.vector_store %arg4[%c0_7, %c0_8], %11 {strides = array<i32>} : memref<4x256xf32, #tpu.memory_space<vmem>>, vector<4x256xf32>,
    return
  }
  func.func @transform_0(%arg0: i32) -> (i32, i32) {
    %c0_i32 = arith.constant 0 : i32
    %c0_i32_0 = arith.constant 0 : i32
    %c0_i32_1 = arith.constant 0 : i32
    return %c0_i32, %c0_i32_0 : i32, i32
  }
  func.func @transform_1(%arg0: i32) -> (i32, i32) {
    %c0_i32 = arith.constant 0 : i32
    %c0_i32_0 = arith.constant 0 : i32
    %c0_i32_1 = arith.constant 0 : i32
    return %c0_i32, %c0_i32_0 : i32, i32
  }
  func.func @transform_2(%arg0: i32) -> (i32, i32) {
    %c0_i32 = arith.constant 0 : i32
    %c0_i32_0 = arith.constant 0 : i32
    return %c0_i32, %arg0 : i32, i32
  }
  func.func @transform_3(%arg0: i32) -> (i32, i32) {
    %c0_i32 = arith.constant 0 : i32
    %c0_i32_0 = arith.constant 0 : i32
    return %c0_i32, %arg0 : i32, i32
  }
}

</mosaic_0001>

<bundles_post_ra>
// kernel: mmes_forward.2
= control target key start
LH: loop header
LB: loop body
LE: loop exit
PB: predicated region body
PF: predicated region fallthrough
CT: control target
= control target key end

     0   :  { %v1341_v3 = vmov 0   ;;  %vm1958_vm0 = vcmask 130048   ;;  %s1947_s0 = inlined_call_operand.vmem [shape: f32[16,1024], index: 0, kind: input, shape index: {}]   ;;  %s1948_s1 = inlined_call_operand.vmem [shape: bf16[16,1024], index: 1, kind: input, shape index: {}]   ;;  %s1949_s2 = inlined_call_operand.vmem [shape: bf16[32,16], index: 2, kind: input, shape index: {}]   ;;  %s1950_s3 = inlined_call_operand.vmem [shape: f32[32,1], index: 3, kind: input, shape index: {}]   ;;  %s1951_s5 = inlined_call_operand.vmem [shape: f32[16,1], index: 5, kind: input, shape index: {}]   ;;  %s1952_s7 = inlined_call_operand.vmem [shape: f32[32,1], index: 7, kind: input, shape index: {}]   ;;  %s1953_s9 = inlined_call_operand.vmem [shape: f32[16,1], index: 9, kind: input, shape index: {}]   ;;  %s1954_s4 = inlined_call_operand.vmem [shape: bf16[16,32], index: 4, kind: input, shape index: {}]   ;;  %s1955_s6 = inlined_call_operand.vmem [shape: bf16[32,16], index: 6, kind: input, shape index: {}]   ;;  %s1956_s8 = inlined_call_operand.vmem [shape: bf16[16,32], index: 8, kind: input, shape index: {}]   ;;  %s1957_s10 = inlined_call_operand.vmem [shape: f32[16,1024], index: 10, kind: output, shape index: {}]  }
   0x1   :  { %v37_v0 = vld [vmem:[%s1947_s0 + $0x8] sm:$0xff]  ;;  %v52_v2 = vld [vmem:[%s1948_s1] sm:$0xff]  ;;  %177 = vmatprep.mubr.bf16.mxu0 %v1341_v3  ;;  %230 = vmatprep.mubr.bf16.mxu1 %v1341_v3  ;;  %v39_v6 = vld [vmem:[%s1947_s0 + $0x18] sm:$0xff] }
   0x2   :  { %v45_v1 = vld [vmem:[%s1947_s0 + $0x48] sm:$0xff]  ;;  %v56_v4 = vld [vmem:[%s1948_s1 + $0x20] sm:$0xff]  ;;  %v61_v5 = vunpack.c.h.bf16 %v52_v2  ;;  %v47_v7 = vld [vmem:[%s1947_s0 + $0x58] sm:$0xff]  ;;  %v60_v8 = vunpack.c.l.bf16 %v52_v2  ;;  %1333 = vset.pattern.permute.xlu0 %v1341_v3  ;;  %1334 = vset.pattern.permute.xlu1 %v1341_v3 }
   0x3   :  { %v69_v9 = vunpack.c.h.bf16 %v56_v4  ;;  %v53_v10 = vld [vmem:[%s1948_s1 + $0x8] sm:$0xff]  ;;  %v36_v12 = vld [vmem:[%s1947_s0] sm:$0xff]  ;;  %v68_v13 = vunpack.c.l.bf16 %v56_v4  ;;  %v38_v19 = vld [vmem:[%s1947_s0 + $0x10] sm:$0xff] }
   0x4   :  { %v57_v11 = vld [vmem:[%s1948_s1 + $0x28] sm:$0xff]  ;;  %v77_v14 = vadd.f32 %v61_v5, %v37_v0  ;;  %v63_v15 = vunpack.c.h.bf16 %v53_v10  ;;  %v44_v17 = vld [vmem:[%s1947_s0 + $0x40] sm:$0xff]  ;;  %v76_v18 = vadd.f32 %v60_v8, %v36_v12  ;;  %v46_v20 = vld [vmem:[%s1947_s0 + $0x50] sm:$0xff]  ;;  %v62_v23 = vunpack.c.l.bf16 %v53_v10 }
   0x5   :  { %v71_v16 = vunpack.c.h.bf16 %v57_v11  ;;  %v85_v21 = vadd.f32 %v69_v9, %v45_v1  ;;  %v84_v22 = vadd.f32 %v68_v13, %v44_v17  ;;  %v70_v24 = vunpack.c.l.bf16 %v57_v11  ;;  %v1440_v31 = vld [vmem:[%s1949_s2] sm:$0xff]   ;;  %v41_v32 = vld [vmem:[%s1947_s0 + $0x28] sm:$0xff]  ;;  %v54_v34 = vld [vmem:[%s1948_s1 + $0x10] sm:$0xff] }
   0x6   :  { %v79_v25 = vadd.f32 %v63_v15, %v39_v6  ;;  %v78_v29 = vadd.f32 %v62_v23, %v38_v19  ;;  %v49_v33 = vld [vmem:[%s1947_s0 + $0x68] sm:$0xff]  ;;  %v58_v36 = vld [vmem:[%s1948_s1 + $0x30] sm:$0xff]  ;;  %v64_v37 = vunpack.c.l.bf16 %v54_v34  ;;  %v65_v38 = vunpack.c.h.bf16 %v54_v34  ;;  %v43_v39 = vld [vmem:[%s1947_s0 + $0x38] sm:$0xff] }
   0x7   :  { %v87_v26 = vadd.f32 %v71_v16, %v47_v7  ;;  %v93_v27 = vpack.c.bf16 %v85_v21, %v77_v14  ;;  %v92_v28 = vpack.c.bf16 %v84_v22, %v76_v18  ;;  %v86_v30 = vadd.f32 %v70_v24, %v46_v20  ;;  %v51_v40 = vld [vmem:[%s1947_s0 + $0x78] sm:$0xff]  ;;  %v40_v46 = vld [vmem:[%s1947_s0 + $0x20] sm:$0xff]  ;;  %v42_v52 = vld [vmem:[%s1947_s0 + $0x30] sm:$0xff] }
   0x8   :  { %v72_v42 = vunpack.c.l.bf16 %v58_v36  ;;  %v73_v43 = vunpack.c.h.bf16 %v58_v36  ;;  %v55_v44 = vld [vmem:[%s1948_s1 + $0x18] sm:$0xff]  ;;  %v81_v47 = vadd.f32 %v65_v38, %v41_v32  ;;  %v48_v51 = vld [vmem:[%s1947_s0 + $0x60] sm:$0xff]  ;;  %v50_v53 = vld [vmem:[%s1947_s0 + $0x70] sm:$0xff]  ;;  %v80_v56 = vadd.f32 %v64_v37, %v40_v46 }
   0x9   :  { %v95_v35 = vpack.c.bf16 %v87_v26, %v79_v25  ;;  %159 = vmatprep.subr.bf16.mxu0 %v93_v27  ;;  %v94_v41 = vpack.c.bf16 %v86_v30, %v78_v29  ;;  %v59_v45 = vld [vmem:[%s1948_s1 + $0x38] sm:$0xff]  ;;  %v66_v48 = vunpack.c.l.bf16 %v55_v44  ;;  %v67_v49 = vunpack.c.h.bf16 %v55_v44  ;;  %v106_v58 = vld [vmem:[%s1950_s3 + $0x10] sm:$0xff]  ;;  %v104_v59 = vld [vmem:[%s1950_s3] sm:$0xff] }
   0xa   :  { %160 = vmatpush1.bf16.msra.mxu0 %v92_v28  ;;  %v74_v50 = vunpack.c.l.bf16 %v59_v45  ;;  %v89_v54 = vadd.f32 %v73_v43, %v49_v33  ;;  %v75_v55 = vunpack.c.h.bf16 %v59_v45  ;;  %v88_v57 = vadd.f32 %v72_v42, %v48_v51  ;;  %120 = vperm.xlu0 %1333, %v106_v58   ;;  %v107_v2 = vld [vmem:[%s1950_s3 + $0x18] sm:$0xff]  ;;  %v105_v5 = vld [vmem:[%s1950_s3 + $0x8] sm:$0xff]  ;;  %v471_v8 = vld [vmem:[%s1951_s5] sm:$0xff] }
   0xb   :  { %212 = vmatprep.subr.bf16.mxu1 %v95_v35  ;;  %v83_v60 = vadd.f32 %v67_v49, %v43_v39  ;;  %v82_v61 = vadd.f32 %v66_v48, %v42_v52  ;;  %110 = vperm.xlu1 %1334, %v104_v59   ;;  %v1336_v7 = vld [vmem:[%s1949_s2 + $0x8] sm:$0xff]   ;;  %v726_v10 = vld [vmem:[%s1952_s7 + $0x10] sm:$0xff]  ;;  %v727_v11 = vld [vmem:[%s1952_s7 + $0x18] sm:$0xff] }
   0xc   :  { %213 = vmatpush1.bf16.msra.mxu1 %v94_v41  ;;  %v90_v62 = vadd.f32 %v74_v50, %v50_v53  ;;  %v97_v63 = vpack.c.bf16 %v89_v54, %v81_v47  ;;  %v91_v0 = vadd.f32 %v75_v55, %v51_v40  ;;  %v96_v1 = vpack.c.bf16 %v88_v57, %v80_v56  ;;  %v472_v9 = vld [vmem:[%s1951_s5 + $0x8] sm:$0xff]  ;;  %v724_v12 = vld [vmem:[%s1952_s7] sm:$0xff] }
   0xd   :  { %1304 = vmatmul.mubr.msk.bf16.vlgmr.msra.gmra.mxu0 %vm1958_vm0, %v1440_v31  ;;  %v725_v13 = vld [vmem:[%s1952_s7 + $0x8] sm:$0xff]  ;;  %v1090_v14 = vld [vmem:[%s1953_s9] sm:$0xff] }
   0xe   :  { %187 = vmatprep.mubr.bf16.mxu0 %v1341_v3  ;;  %v98_v4 = vpack.c.bf16 %v90_v62, %v82_v61  ;;  %265 = vmatprep.subr.bf16.mxu0 %v97_v63  ;;  %v99_v6 = vpack.c.bf16 %v91_v0, %v83_v60  ;;  %v1091_v15 = vld [vmem:[%s1953_s9 + $0x8] sm:$0xff] }
   0xf   :  { %1306 = vmatmul.mubr.msk.bf16.vlgmr.msra.gmra.mxu1 %vm1958_vm0, %v1440_v31  ;;  %266 = vmatpush1.bf16.msra.mxu0 %v96_v1 }
  0x10   :  { %240 = vmatprep.mubr.bf16.mxu1 %v1341_v3  ;;  %125 = vperm.xlu0 %1333, %v107_v2  }
  0x11   :  { %318 = vmatprep.subr.bf16.mxu1 %v99_v6  ;;  %115 = vperm.xlu1 %1334, %v105_v5  }
  0x12   :  { %319 = vmatpush1.bf16.msra.mxu1 %v98_v4 }
  0x14   :  { %475 = vperm.xlu0 %1333, %v471_v8  }
  0x15   :  { %1305 = vmatmul.mubr.msk.bf16.gmra.mxu0 %vm1958_vm0, %v1336_v7  ;;  %480 = vperm.xlu1 %1334, %v472_v9  }
  0x16   :  { %283 = vmatprep.mubr.bf16.mxu0 %v1341_v3 }
  0x17   :  { %1307 = vmatmul.mubr.msk.bf16.gmra.mxu1 %vm1958_vm0, %v1336_v7 }
  0x18   :  { %336 = vmatprep.mubr.bf16.mxu1 %v1341_v3  ;;  %740 = vperm.xlu0 %1333, %v726_v10  }
  0x19   :  { %745 = vperm.xlu1 %1334, %v727_v11  }
  0x1c   :  { %730 = vperm.xlu0 %1333, %v724_v12  }
  0x1d   :  { %1308 = vmatmul.mubr.msk.bf16.vlgmr.msra.gmra.mxu0 %vm1958_vm0, %v1440_v31  ;;  %735 = vperm.xlu1 %1334, %v725_v13  }
  0x1e   :  { %293 = vmatprep.mubr.bf16.mxu0 %v1341_v3 }
  0x1f   :  { %1310 = vmatmul.mubr.msk.bf16.vlgmr.msra.gmra.mxu1 %vm1958_vm0, %v1440_v31 }
  0x20   :  { %346 = vmatprep.mubr.bf16.mxu1 %v1341_v3  ;;  %1094 = vperm.xlu0 %1333, %v1090_v14  }
  0x21   :  { %1099 = vperm.xlu1 %1334, %v1091_v15  }
  0x25   :  { %1309 = vmatmul.mubr.msk.bf16.gmra.mxu0 %vm1958_vm0, %v1336_v7 }
  0x26   :  { %524 = vmatprep.mubr.bf16.mxu0 %v1341_v3 }
  0x27   :  { %1311 = vmatmul.mubr.msk.bf16.gmra.mxu1 %vm1958_vm0, %v1336_v7 }
  0x28   :  { %567 = vmatprep.mubr.bf16.mxu1 %v1341_v3 }
  0x85   :  { %v1547_v31 = vpop.permute.xlu0 %120 }
  0x86   :  { %v1537_v16 = vpop.permute.xlu1 %110 }
  0x8b   :  { %v1553_v47 = vpop.permute.xlu0 %125 }
  0x8c   :  { %v1540_v22 = vpop.permute.xlu1 %115 }
  0xcd   :  { %v179_v17 = vpop.f32.mrf.mxu0 }
  0xce   :  { %v180_v21 = vadd.f32 %v179_v17, %v1537_v16 }
  0xcf   :  { %v232_v18 = vpop.f32.mrf.mxu1  ;;  %v181_v19 = vpop.f32.mrf.mxu0 }
  0xd0   :  { %v233_v24 = vadd.f32 %v232_v18, %v1537_v16  ;;  %v182_v25 = vadd.f32 %v181_v19, %v1537_v16  ;;  %vm357_vm1 = vcmp.ge.f32.partialorder %v180_v21, 0.0  ;;  %v389_v33 = vmul.f32 0.2, %v180_v21 }
  0xd1   :  { %v234_v20 = vpop.f32.mrf.mxu1  ;;  %v183_v23 = vpop.f32.mrf.mxu0 }
  0xd2   :  { %v184_v26 = vadd.f32 %v183_v23, %v1540_v22  ;;  %v235_v28 = vadd.f32 %v234_v20, %v1537_v16  ;;  %vm359_vm2 = vcmp.ge.f32.partialorder %v233_v24, 0.0  ;;  %v391_v36 = vmul.f32 0.2, %v233_v24 }
  0xd3   :  { %v236_v27 = vpop.f32.mrf.mxu1  ;;  %v185_v30 = vpop.f32.mrf.mxu0  ;;  %v390_v37 = vmul.f32 0.2, %v182_v25  ;;  %vm358_vm4 = vcmp.ge.f32.partialorder %v182_v25, 0.0  ;;  %v1556_v48 = vsel %vm357_vm1, %v180_v21, %v389_v33 }
  0xd4   :  { %v237_v29 = vadd.f32 %v236_v27, %v1540_v22  ;;  %v397_v34 = vmul.f32 0.2, %v184_v26  ;;  %vm365_vm3 = vcmp.ge.f32.partialorder %v184_v26, 0.0  ;;  %v392_v39 = vmul.f32 0.2, %v235_v28 }
  0xd5   :  { %v238_v32 = vpop.f32.mrf.mxu1  ;;  %v189_v35 = vpop.f32.mrf.mxu0  ;;  %v186_v41 = vadd.f32 %v185_v30, %v1540_v22  ;;  %vm360_vm5 = vcmp.ge.f32.partialorder %v235_v28, 0.0  ;;  %v1559_v49 = vsel %vm359_vm2, %v233_v24, %v391_v36  ;;  %v1563_v52 = vsel %vm358_vm4, %v182_v25, %v390_v37 }
  0xd6   :  { %v399_v40 = vmul.f32 0.2, %v237_v29  ;;  %vm367_vm6 = vcmp.ge.f32.partialorder %v237_v29, 0.0  ;;  %v239_v43 = vadd.f32 %v238_v32, %v1540_v22  ;;  %v1551_v45 = vsel %vm365_vm3, %v184_v26, %v397_v34 }
  0xd7   :  { %v242_v38 = vpop.f32.mrf.mxu1  ;;  %v191_v42 = vpop.f32.mrf.mxu0  ;;  %v190_v50 = vadd.f32 %v189_v35, %v1547_v31  ;;  %v398_v54 = vmul.f32 0.2, %v186_v41  ;;  %v1569_v57 = vsel %vm360_vm5, %v235_v28, %v392_v39  ;;  %v453_v58 = vpack.c.bf16 %v1551_v45, %v1556_v48 }
  0xd8   :  { %v1565_v53 = vsel %vm367_vm6, %v237_v29, %v399_v40  ;;  %vm366_vm7 = vcmp.ge.f32.partialorder %v186_v41, 0.0  ;;  %vm368_vm8 = vcmp.ge.f32.partialorder %v239_v43, 0.0  ;;  %v192_v61 = vadd.f32 %v191_v42, %v1547_v31 }
  0xd9   :  { %v244_v44 = vpop.f32.mrf.mxu1  ;;  %v193_v46 = vpop.f32.mrf.mxu0  ;;  %v455_v2 = vpack.c.bf16 %v1565_v53, %v1559_v49  ;;  %v400_v4 = vmul.f32 0.2, %v239_v43  ;;  %vm373_vm9 = vcmp.ge.f32.partialorder %v190_v50, 0.0  ;;  %v243_v5 = vadd.f32 %v242_v38, %v1547_v31 }
  0xda   :  { %v194_v55 = vadd.f32 %v193_v46, %v1553_v47  ;;  %v245_v62 = vadd.f32 %v244_v44, %v1547_v31  ;;  %v405_v7 = vmul.f32 0.2, %v190_v50  ;;  %v1582_v11 = vsel %vm366_vm7, %v186_v41, %v398_v54 }
  0xdb   :  { %v246_v51 = vpop.f32.mrf.mxu1  ;;  %v195_v56 = vpop.f32.mrf.mxu0  ;;  %v406_v15 = vmul.f32 0.2, %v192_v61  ;;  %v407_v19 = vmul.f32 0.2, %v243_v5  ;;  %vm374_vm14 = vcmp.ge.f32.partialorder %v192_v61, 0.0  ;;  %v432_v21 = vsel %vm368_vm8, %v239_v43, %v400_v4 }
  0xdc   :  { %v247_v59 = vadd.f32 %v246_v51, %v1553_v47  ;;  %v196_v63 = vadd.f32 %v195_v56, %v1553_v47  ;;  %v413_v8 = vmul.f32 0.2, %v194_v55  ;;  %v408_v17 = vmul.f32 0.2, %v245_v62 }
  0xdd   :  { %v248_v60 = vpop.f32.mrf.mxu1  ;;  %v285_v1 = vpop.f32.mrf.mxu0  ;;  %vm381_vm12 = vcmp.ge.f32.partialorder %v194_v55, 0.0  ;;  %vm376_vm15 = vcmp.ge.f32.partialorder %v245_v62, 0.0  ;;  %v437_v23 = vsel %vm373_vm9, %v190_v50, %v405_v7  ;;  %vm375_vm1 = vcmp.ge.f32.partialorder %v243_v5, 0.0 }
  0xde   :  { %v249_v0 = vadd.f32 %v248_v60, %v1553_v47  ;;  %v414_v9 = vmul.f32 0.2, %v196_v63  ;;  %v415_v12 = vmul.f32 0.2, %v247_v59  ;;  %vm382_vm10 = vcmp.ge.f32.partialorder %v196_v63, 0.0 }
  0xdf   :  { %v338_v6 = vpop.f32.mrf.mxu1  ;;  %v287_v10 = vpop.f32.mrf.mxu0  ;;  %vm383_vm13 = vcmp.ge.f32.partialorder %v247_v59, 0.0  ;;  %v445_v27 = vsel %vm381_vm12, %v194_v55, %v413_v8  ;;  %v1589_v29 = vadd.f32 %v285_v1, %v1537_v16  ;;  %v438_v35 = vsel %vm374_vm14, %v192_v61, %v406_v15 }
  0xe0   :  { %vm384_vm11 = vcmp.ge.f32.partialorder %v249_v0, 0.0  ;;  %v416_v13 = vmul.f32 0.2, %v249_v0  ;;  %v446_v25 = vsel %vm382_vm10, %v196_v63, %v414_v9  ;;  %v447_v28 = vsel %vm383_vm13, %v247_v59, %v415_v12  ;;  %v1644_v9 = vld [vmem:[%s1954_s4] sm:$0xff]  }
  0xe1   :  { %v340_v14 = vpop.f32.mrf.mxu1  ;;  %v289_v18 = vpop.f32.mrf.mxu0  ;;  %v1592_v30 = vadd.f32 %v338_v6, %v1537_v16  ;;  %v1595_v33 = vadd.f32 %v287_v10, %v1537_v16  ;;  %v440_v36 = vsel %vm376_vm15, %v245_v62, %v408_v17  ;;  %vm488_vm2 = vcmask 261120  }
  0xe2   :  { %v448_v26 = vsel %vm384_vm11, %v249_v0, %v416_v13  ;;  %v1598_v34 = vadd.f32 %v340_v14, %v1537_v16  ;;  %v439_v38 = vsel %vm375_vm1, %v243_v5, %v407_v19  ;;  %v1603_v39 = vadd.f32 %v289_v18, %v1540_v22 }
  0xe3   :  { %v342_v20 = vpop.f32.mrf.mxu1  ;;  %v291_v24 = vpop.f32.mrf.mxu0  ;;  %v462_v40 = vpack.c.bf16 %v446_v25, %v438_v35  ;;  %v464_v41 = vpack.c.bf16 %v448_v26, %v440_v36  ;;  %v461_v43 = vpack.c.bf16 %v445_v27, %v437_v23  ;;  %v463_v44 = vpack.c.bf16 %v447_v28, %v439_v38 }
  0xe4   :  { %v1606_v46 = vadd.f32 %v342_v20, %v1540_v22  ;;  %v1609_v16 = vadd.f32 %v291_v24, %v1540_v22  ;;  %v1612_v51 = vmul.f32 0.2, %v1589_v29  ;;  %v1615_v54 = vmul.f32 0.2, %v1592_v30 }
  0xe5   :  { %v344_v32 = vpop.f32.mrf.mxu1  ;;  %v295_v37 = vpop.f32.mrf.mxu0  ;;  %504 = vmatprep.subr.bf16.mxu0 %v462_v40  ;;  %547 = vmatprep.subr.bf16.mxu1 %v464_v41  ;;  %vm362_vm3 = vcmp.ge.f32.partialorder %v1595_v33, 0.0  ;;  %v1623_v60 = vmul.f32 0.2, %v1595_v33  ;;  %v1626_v61 = vmul.f32 0.2, %v1598_v34  ;;  %vm364_vm4 = vcmp.ge.f32.partialorder %v1598_v34, 0.0 }
  0xe6   :  { %v1618_v55 = vadd.f32 %v344_v32, %v1540_v22  ;;  %v296_v56 = vadd.f32 %v295_v37, %v1547_v31  ;;  %505 = vmatpush1.bf16.msra.mxu0 %v461_v43  ;;  %548 = vmatpush1.bf16.msra.mxu1 %v463_v44  ;;  %v454_v22 = vpack.c.bf16 %v1582_v11, %v1563_v52  ;;  %vm369_vm5 = vcmp.ge.f32.partialorder %v1603_v39, 0.0 }
  0xe7   :  { %v348_v42 = vpop.f32.mrf.mxu1  ;;  %v297_v50 = vpop.f32.mrf.mxu0  ;;  %v401_v0 = vmul.f32 0.2, %v1603_v39  ;;  %v456_v1 = vpack.c.bf16 %v432_v21, %v1569_v57  ;;  %vm371_vm6 = vcmp.ge.f32.partialorder %v1606_v46, 0.0  ;;  %v403_v6 = vmul.f32 0.2, %v1606_v46 }
  0xe8   :  { %v349_v62 = vadd.f32 %v348_v42, %v1547_v31  ;;  %v298_v4 = vadd.f32 %v297_v50, %v1547_v31  ;;  %vm370_vm7 = vcmp.ge.f32.partialorder %v1609_v16, 0.0  ;;  %506 = vmatprep.subr.bf16.mxu0 %v454_v22  ;;  %vm361_vm8 = vcmp.ge.f32.partialorder %v1589_v29, 0.0  ;;  %v1703_v50 = vpop.permute.xlu1 %480 }
  0xe9   :  { %v350_v59 = vpop.f32.mrf.mxu1  ;;  %v299_v63 = vpop.f32.mrf.mxu0  ;;  %v402_v57 = vmul.f32 0.2, %v1609_v16  ;;  %vm372_vm9 = vcmp.ge.f32.partialorder %v1618_v55, 0.0  ;;  %v404_v10 = vmul.f32 0.2, %v1618_v55  ;;  %vm377_vm10 = vcmp.ge.f32.partialorder %v296_v56, 0.0  ;;  %549 = vmatprep.subr.bf16.mxu1 %v456_v1 }
  0xea   :  { %v351_v52 = vadd.f32 %v350_v59, %v1547_v31  ;;  %v300_v7 = vadd.f32 %v299_v63, %v1553_v47  ;;  %v409_v31 = vmul.f32 0.2, %v296_v56  ;;  %v411_v12 = vmul.f32 0.2, %v349_v62  ;;  %507 = vmatpush1.bf16.msra.mxu0 %v453_v58  ;;  %550 = vmatpush1.bf16.msra.mxu1 %v455_v2 }
  0xeb   :  { %v352_v5 = vpop.f32.mrf.mxu1  ;;  %v301_v8 = vpop.f32.mrf.mxu0  ;;  %v410_v15 = vmul.f32 0.2, %v298_v4  ;;  %vm378_vm13 = vcmp.ge.f32.partialorder %v298_v4, 0.0  ;;  %vm379_vm11 = vcmp.ge.f32.partialorder %v349_v62, 0.0  ;;  %v434_v21 = vsel %vm370_vm7, %v1609_v16, %v402_v57 }
  0xec   :  { %v417_v13 = vmul.f32 0.2, %v300_v7  ;;  %v353_v14 = vadd.f32 %v352_v5, %v1553_v47  ;;  %vm385_vm12 = vcmp.ge.f32.partialorder %v300_v7, 0.0  ;;  %v302_v17 = vadd.f32 %v301_v8, %v1553_v47 }
  0xed   :  { %v354_v11 = vpop.f32.mrf.mxu1  ;;  %v412_v19 = vmul.f32 0.2, %v351_v52  ;;  %vm380_vm15 = vcmp.ge.f32.partialorder %v351_v52, 0.0  ;;  %1313 = vmatmul.mubr.msk.bf16.vlgmr.msra.gmra.mxu0 %vm488_vm2, %v1644_v9  ;;  %1314 = vmatmul.mubr.msk.bf16.vlgmr.msra.gmra.mxu1 %vm488_vm2, %v1644_v9  ;;  %v441_v48 = vsel %vm377_vm10, %v296_v56, %v409_v31  ;;  %v442_v58 = vsel %vm378_vm13, %v298_v4, %v410_v15 }
  0xee   :  { %v355_v18 = vadd.f32 %v354_v11, %v1553_v47  ;;  %vm387_vm14 = vcmp.ge.f32.partialorder %v353_v14, 0.0  ;;  %v419_v20 = vmul.f32 0.2, %v353_v14  ;;  %vm386_vm1 = vcmp.ge.f32.partialorder %v302_v17, 0.0  ;;  %610 = vmatprep.mubr.bf16.mxu0 %v1341_v3  ;;  %653 = vmatprep.mubr.bf16.mxu1 %v1341_v3 }
  0xef   :  { %v418_v45 = vmul.f32 0.2, %v302_v17  ;;  %v449_v49 = vsel %vm385_vm12, %v300_v7, %v417_v13  ;;  %v444_v24 = vsel %vm380_vm15, %v351_v52, %v412_v19  ;;  %v436_v26 = vsel %vm372_vm9, %v1618_v55, %v404_v10 }
  0xf0   :  { %vm388_vm0 = vcmp.ge.f32.partialorder %v355_v18, 0.0  ;;  %v420_v53 = vmul.f32 0.2, %v355_v18  ;;  %v451_v47 = vsel %vm387_vm14, %v353_v14, %v419_v20  ;;  %v443_v27 = vsel %vm379_vm11, %v349_v62, %v411_v12 }
  0xf1   :  { %v450_v2 = vsel %vm386_vm1, %v302_v17, %v418_v45  ;;  %v465_v28 = vpack.c.bf16 %v449_v49, %v441_v48  ;;  %v426_v35 = vsel %vm362_vm3, %v1595_v33, %v1623_v60  ;;  %v433_v36 = vsel %vm369_vm5, %v1603_v39, %v401_v0 }
  0xf2   :  { %v466_v23 = vpack.c.bf16 %v450_v2, %v442_v58  ;;  %v452_v25 = vsel %vm388_vm0, %v355_v18, %v420_v53  ;;  %v467_v37 = vpack.c.bf16 %v451_v47, %v443_v27  ;;  %v458_v38 = vpack.c.bf16 %v434_v21, %v426_v35  ;;  %v1338_v58 = vld [vmem:[%s1955_s6] sm:$0xff]  }
  0xf3   :  { %v468_v32 = vpack.c.bf16 %v452_v25, %v444_v24  ;;  %v428_v40 = vsel %vm364_vm4, %v1598_v34, %v1626_v61  ;;  %v435_v41 = vsel %vm371_vm6, %v1606_v46, %v403_v6  ;;  %v425_v33 = vsel %vm361_vm8, %v1589_v29, %v1612_v51  ;;  %v476_v46 = vpop.permute.xlu0 %475 }
  0xf4   :  { %590 = vmatprep.subr.bf16.mxu0 %v466_v23  ;;  %v460_v42 = vpack.c.bf16 %v436_v26, %v428_v40  ;;  %vm1959_vm0 = vcmp.ge.f32.partialorder %v1592_v30, 0.0  ;;  %v457_v34 = vpack.c.bf16 %v433_v36, %v425_v33  ;;  %vm1960_vm12 = vcmask 130048  }
  0xf5   :  { %633 = vmatprep.subr.bf16.mxu1 %v468_v32  ;;  %591 = vmatpush1.bf16.msra.mxu0 %v465_v28  ;;  %v427_v39 = vsel %vm1959_vm0, %v1592_v30, %v1615_v54  ;;  %vm1961_vm13 = vmmov %vm1960_vm12 }
  0xf6   :  { %634 = vmatpush1.bf16.msra.mxu1 %v467_v37  ;;  %592 = vmatprep.subr.bf16.mxu0 %v458_v38  ;;  %v459_v43 = vpack.c.bf16 %v435_v41, %v427_v39 }
  0xf7   :  { %635 = vmatprep.subr.bf16.mxu1 %v460_v42 }
  0xf9   :  { %593 = vmatpush1.bf16.msra.mxu0 %v457_v34 }
  0xfa   :  { %636 = vmatpush1.bf16.msra.mxu1 %v459_v43 }
  0xfc   :  { %1315 = vmatmul.mubr.msk.bf16.vlgmr.msra.gmra.mxu0 %vm488_vm2, %v1644_v9 }
  0xfd   :  { %1316 = vmatmul.mubr.msk.bf16.vlgmr.msra.gmra.mxu1 %vm488_vm2, %v1644_v9  ;;  %796 = vmatprep.mubr.bf16.mxu0 %v1341_v3 }
  0xfe   :  { %849 = vmatprep.mubr.bf16.mxu1 %v1341_v3 }
 0x1ad   :  { %v526_v29 = vpop.f32.mrf.mxu0  ;;  %v569_v44 = vpop.f32.mrf.mxu1 }
 0x1ae   :  { %v527_v51 = vadd.f32 %v526_v29, %v476_v46  ;;  %v570_v62 = vadd.f32 %v569_v44, %v476_v46  ;;  %v1339_v29 = vld [vmem:[%s1955_s6 + $0x8] sm:$0xff]  }
 0x1af   :  { %v528_v16 = vpop.f32.mrf.mxu0  ;;  %v571_v30 = vpop.f32.mrf.mxu1 }
 0x1b0   :  { %v529_v54 = vadd.f32 %v528_v16, %v476_v46  ;;  %v572_v59 = vadd.f32 %v571_v30, %v476_v46  ;;  %vm664_vm3 = vcmp.ge.f32.partialorder %v527_v51, 0.0  ;;  %v680_v52 = vmul.f32 0.2, %v527_v51 }
 0x1b1   :  { %v530_v55 = vpop.f32.mrf.mxu0  ;;  %v573_v56 = vpop.f32.mrf.mxu1  ;;  %v682_v8 = vmul.f32 0.2, %v570_v62  ;;  %vm666_vm9 = vcmp.ge.f32.partialorder %v570_v62, 0.0 }
 0x1b2   :  { %v531_v60 = vadd.f32 %v530_v55, %v1703_v50  ;;  %v574_v61 = vadd.f32 %v573_v56, %v1703_v50  ;;  %v681_v0 = vmul.f32 0.2, %v529_v54  ;;  %vm665_vm5 = vcmp.ge.f32.partialorder %v529_v54, 0.0 }
 0x1b3   :  { %v532_v22 = vpop.f32.mrf.mxu0  ;;  %v575_v63 = vpop.f32.mrf.mxu1  ;;  %v683_v7 = vmul.f32 0.2, %v572_v59  ;;  %vm667_vm7 = vcmp.ge.f32.partialorder %v572_v59, 0.0  ;;  %v696_v13 = vsel %vm664_vm3, %v527_v51, %v680_v52  ;;  %v698_v19 = vsel %vm666_vm9, %v570_v62, %v682_v8 }
 0x1b4   :  { %v688_v1 = vmul.f32 0.2, %v531_v60  ;;  %vm672_vm4 = vcmp.ge.f32.partialorder %v531_v60, 0.0  ;;  %v690_v4 = vmul.f32 0.2, %v574_v61  ;;  %v533_v5 = vadd.f32 %v532_v22, %v1703_v50  ;;  %v1737_v62 = vpop.permute.xlu0 %740  ;;  %v1739_v22 = vpop.permute.xlu1 %745 }
 0x1b5   :  { %v576_v6 = vadd.f32 %v575_v63, %v1703_v50  ;;  %vm674_vm6 = vcmp.ge.f32.partialorder %v574_v61, 0.0  ;;  %v697_v31 = vsel %vm665_vm5, %v529_v54, %v681_v0  ;;  %v699_v15 = vsel %vm667_vm7, %v572_v59, %v683_v7 }
 0x1b6   :  { %vm673_vm8 = vcmp.ge.f32.partialorder %v533_v5, 0.0  ;;  %v689_v9 = vmul.f32 0.2, %v533_v5  ;;  %v704_v57 = vsel %vm672_vm4, %v531_v60, %v688_v1  ;;  %v706_v11 = vsel %vm674_vm6, %v574_v61, %v690_v4  ;;  %vm1962_vm6 = vmmov %vm1960_vm12 }
 0x1b7   :  { %vm675_vm10 = vcmp.ge.f32.partialorder %v576_v6, 0.0  ;;  %v691_v10 = vmul.f32 0.2, %v576_v6  ;;  %v712_v20 = vpack.c.bf16 %v704_v57, %v696_v13  ;;  %v714_v49 = vpack.c.bf16 %v706_v11, %v698_v19  ;;  %vm1963_vm7 = vmmov %vm1962_vm6 }
 0x1b8   :  { %v705_v12 = vsel %vm673_vm8, %v533_v5, %v689_v9  ;;  %vm1964_vm8 = vmmov %vm1962_vm6  ;;  %v1741_v4 = vpop.permute.xlu0 %730 }
 0x1b9   :  { %v713_v14 = vpack.c.bf16 %v705_v12, %v697_v31  ;;  %v707_v17 = vsel %vm675_vm10, %v576_v6, %v691_v10  ;;  %vm1965_vm9 = vmmov %vm1962_vm6  ;;  %v1743_v6 = vpop.permute.xlu1 %735 }
 0x1ba   :  { %v715_v45 = vpack.c.bf16 %v707_v17, %v699_v15  ;;  %vm1966_vm10 = vmmov %vm1962_vm6 }
 0x1bb   :  { %778 = vmatprep.subr.bf16.mxu0 %v713_v14 }
 0x1bc   :  { %v612_v18 = vpop.f32.mrf.mxu0  ;;  %831 = vmatprep.subr.bf16.mxu1 %v715_v45  ;;  %779 = vmatpush1.bf16.msra.mxu0 %v712_v20 }
 0x1bd   :  { %v655_v48 = vpop.f32.mrf.mxu1  ;;  %v613_v53 = vadd.f32 %v612_v18, %v476_v46  ;;  %832 = vmatpush1.bf16.msra.mxu1 %v714_v49 }
 0x1be   :  { %v614_v47 = vpop.f32.mrf.mxu0  ;;  %v656_v25 = vadd.f32 %v655_v48, %v476_v46 }
 0x1bf   :  { %v615_v2 = vadd.f32 %v614_v47, %v476_v46  ;;  %v657_v21 = vpop.f32.mrf.mxu1  ;;  %v684_v28 = vmul.f32 0.2, %v613_v53  ;;  %1319 = vmatmul.mubr.msk.bf16.vlgmr.msra.gmra.mxu0 %vm1960_vm12, %v1338_v58  ;;  %vm668_vm3 = vcmp.ge.f32.partialorder %v613_v53, 0.0 }
 0x1c0   :  { %v658_v23 = vadd.f32 %v657_v21, %v476_v46  ;;  %v616_v24 = vpop.f32.mrf.mxu0  ;;  %1321 = vmatmul.mubr.msk.bf16.vlgmr.msra.gmra.mxu1 %vm1961_vm13, %v1338_v58  ;;  %806 = vmatprep.mubr.bf16.mxu0 %v1341_v3  ;;  %v686_v39 = vmul.f32 0.2, %v656_v25  ;;  %vm670_vm4 = vcmp.ge.f32.partialorder %v656_v25, 0.0 }
 0x1c1   :  { %v617_v26 = vadd.f32 %v616_v24, %v1703_v50  ;;  %v659_v27 = vpop.f32.mrf.mxu1  ;;  %vm669_vm11 = vcmp.ge.f32.partialorder %v615_v2, 0.0  ;;  %v685_v36 = vmul.f32 0.2, %v615_v2  ;;  %859 = vmatprep.mubr.bf16.mxu1 %v1341_v3  ;;  %v700_v55 = vsel %vm668_vm3, %v613_v53, %v684_v28 }
 0x1c2   :  { %v660_v32 = vadd.f32 %v659_v27, %v1703_v50  ;;  %v618_v35 = vpop.f32.mrf.mxu0  ;;  %v687_v37 = vmul.f32 0.2, %v658_v23  ;;  %vm671_vm1 = vcmp.ge.f32.partialorder %v658_v23, 0.0  ;;  %v702_v56 = vsel %vm670_vm4, %v656_v25, %v686_v39 }
 0x1c3   :  { %v692_v38 = vmul.f32 0.2, %v617_v26  ;;  %v619_v40 = vadd.f32 %v618_v35, %v1703_v50  ;;  %v661_v41 = vpop.f32.mrf.mxu1  ;;  %vm676_vm14 = vcmp.ge.f32.partialorder %v617_v26, 0.0  ;;  %v701_v16 = vsel %vm669_vm11, %v615_v2, %v685_v36  ;;  %vm1967_vm11 = vmmov %vm1962_vm6 }
 0x1c4   :  { %vm678_vm15 = vcmp.ge.f32.partialorder %v660_v32, 0.0  ;;  %v694_v42 = vmul.f32 0.2, %v660_v32  ;;  %v662_v33 = vadd.f32 %v661_v41, %v1703_v50  ;;  %v703_v51 = vsel %vm671_vm1, %v658_v23, %v687_v37 }
 0x1c5   :  { %vm677_vm0 = vcmp.ge.f32.partialorder %v619_v40, 0.0  ;;  %v693_v34 = vmul.f32 0.2, %v619_v40  ;;  %v708_v44 = vsel %vm676_vm14, %v617_v26, %v692_v38 }
 0x1c6   :  { %vm679_vm5 = vcmp.ge.f32.partialorder %v662_v33, 0.0  ;;  %v695_v43 = vmul.f32 0.2, %v662_v33  ;;  %v710_v46 = vsel %vm678_vm15, %v660_v32, %v694_v42  ;;  %v716_v60 = vpack.c.bf16 %v708_v44, %v700_v55 }
 0x1c7   :  { %v709_v30 = vsel %vm677_vm0, %v619_v40, %v693_v34  ;;  %v718_v61 = vpack.c.bf16 %v710_v46, %v702_v56  ;;  %1320 = vmatmul.mubr.msk.bf16.gmra.mxu0 %vm1962_vm6, %v1339_v29 }
 0x1c8   :  { %v717_v50 = vpack.c.bf16 %v709_v30, %v701_v16  ;;  %v711_v54 = vsel %vm679_vm5, %v662_v33, %v695_v43  ;;  %1322 = vmatmul.mubr.msk.bf16.gmra.mxu1 %vm1963_vm7, %v1339_v29  ;;  %902 = vmatprep.mubr.bf16.mxu0 %v1341_v3 }
 0x1c9   :  { %v719_v59 = vpack.c.bf16 %v711_v54, %v703_v51  ;;  %955 = vmatprep.mubr.bf16.mxu1 %v1341_v3 }
 0x1ca   :  { %884 = vmatprep.subr.bf16.mxu0 %v717_v50 }
 0x1cb   :  { %937 = vmatprep.subr.bf16.mxu1 %v719_v59  ;;  %885 = vmatpush1.bf16.msra.mxu0 %v716_v60 }
 0x1cc   :  { %938 = vmatpush1.bf16.msra.mxu1 %v718_v61 }
 0x1cf   :  { %1323 = vmatmul.mubr.msk.bf16.vlgmr.msra.gmra.mxu0 %vm1964_vm8, %v1338_v58 }
 0x1d0   :  { %1325 = vmatmul.mubr.msk.bf16.vlgmr.msra.gmra.mxu1 %vm1965_vm9, %v1338_v58  ;;  %912 = vmatprep.mubr.bf16.mxu0 %v1341_v3 }
 0x1d1   :  { %965 = vmatprep.mubr.bf16.mxu1 %v1341_v3 }
 0x1d7   :  { %1324 = vmatmul.mubr.msk.bf16.gmra.mxu0 %vm1966_vm10, %v1339_v29 }
 0x1d8   :  { %1326 = vmatmul.mubr.msk.bf16.gmra.mxu1 %vm1967_vm11, %v1339_v29  ;;  %1142 = vmatprep.mubr.bf16.mxu0 %v1341_v3 }
 0x1d9   :  { %1185 = vmatprep.mubr.bf16.mxu1 %v1341_v3 }
 0x27f   :  { %v798_v63 = vpop.f32.mrf.mxu0 }
 0x280   :  { %v851_v0 = vpop.f32.mrf.mxu1  ;;  %v799_v52 = vadd.f32 %v798_v63, %v1741_v4 }
 0x281   :  { %v800_v1 = vpop.f32.mrf.mxu0  ;;  %v852_v8 = vadd.f32 %v851_v0, %v1741_v4 }
 0x282   :  { %v853_v5 = vpop.f32.mrf.mxu1  ;;  %v801_v9 = vadd.f32 %v800_v1, %v1741_v4  ;;  %vm976_vm12 = vcmp.ge.f32.partialorder %v799_v52, 0.0  ;;  %v1008_v14 = vmul.f32 0.2, %v799_v52 }
 0x283   :  { %v802_v7 = vpop.f32.mrf.mxu0  ;;  %v854_v11 = vadd.f32 %v853_v5, %v1741_v4  ;;  %vm978_vm13 = vcmp.ge.f32.partialorder %v852_v8, 0.0  ;;  %v1010_v18 = vmul.f32 0.2, %v852_v8 }
 0x284   :  { %v803_v57 = vadd.f32 %v802_v7, %v1743_v6  ;;  %v855_v10 = vpop.f32.mrf.mxu1  ;;  %v1009_v19 = vmul.f32 0.2, %v801_v9  ;;  %vm977_vm15 = vcmp.ge.f32.partialorder %v801_v9, 0.0  ;;  %v1756_v23 = vsel %vm976_vm12, %v799_v52, %v1008_v14 }
 0x285   :  { %v856_v31 = vadd.f32 %v855_v10, %v1743_v6  ;;  %v804_v12 = vpop.f32.mrf.mxu0  ;;  %v1011_v45 = vmul.f32 0.2, %v854_v11  ;;  %vm979_vm1 = vcmp.ge.f32.partialorder %v854_v11, 0.0  ;;  %v1759_v24 = vsel %vm978_vm13, %v852_v8, %v1010_v18 }
 0x286   :  { %v857_v13 = vpop.f32.mrf.mxu1  ;;  %v1016_v15 = vmul.f32 0.2, %v803_v57  ;;  %vm984_vm14 = vcmp.ge.f32.partialorder %v803_v57, 0.0  ;;  %v805_v49 = vadd.f32 %v804_v12, %v1743_v6  ;;  %v1762_v27 = vsel %vm977_vm15, %v801_v9, %v1009_v19 }
 0x287   :  { %v808_v17 = vpop.f32.mrf.mxu0  ;;  %v1018_v48 = vmul.f32 0.2, %v856_v31  ;;  %vm986_vm0 = vcmp.ge.f32.partialorder %v856_v31, 0.0  ;;  %v858_v47 = vadd.f32 %v857_v13, %v1743_v6  ;;  %v1767_v37 = vsel %vm979_vm1, %v854_v11, %v1011_v45 }
 0x288   :  { %v861_v20 = vpop.f32.mrf.mxu1  ;;  %v1753_v2 = vsel %vm984_vm14, %v803_v57, %v1016_v15  ;;  %v809_v25 = vadd.f32 %v808_v17, %v1737_v62  ;;  %v1017_v32 = vmul.f32 0.2, %v805_v49  ;;  %vm985_vm3 = vcmp.ge.f32.partialorder %v805_v49, 0.0 }
 0x289   :  { %v810_v53 = vpop.f32.mrf.mxu0  ;;  %v1764_v28 = vsel %vm986_vm0, %v856_v31, %v1018_v48  ;;  %v1072_v38 = vpack.c.bf16 %v1753_v2, %v1756_v23  ;;  %vm987_vm4 = vcmp.ge.f32.partialorder %v858_v47, 0.0  ;;  %v1019_v44 = vmul.f32 0.2, %v858_v47 }
 0x28a   :  { %v863_v58 = vpop.f32.mrf.mxu1  ;;  %v811_v42 = vadd.f32 %v810_v53, %v1737_v62  ;;  %v1074_v29 = vpack.c.bf16 %v1764_v28, %v1759_v24  ;;  %vm992_vm5 = vcmp.ge.f32.partialorder %v809_v25, 0.0  ;;  %v862_v46 = vadd.f32 %v861_v20, %v1737_v62 }
 0x28b   :  { %v812_v21 = vpop.f32.mrf.mxu0  ;;  %v864_v33 = vadd.f32 %v863_v58, %v1737_v62  ;;  %v1024_v30 = vmul.f32 0.2, %v809_v25  ;;  %v1780_v55 = vsel %vm985_vm3, %v805_v49, %v1017_v32  ;;  %v1051_v52 = vsel %vm987_vm4, %v858_v47, %v1019_v44 }
 0x28c   :  { %v865_v26 = vpop.f32.mrf.mxu1  ;;  %v813_v35 = vadd.f32 %v812_v21, %v1739_v22  ;;  %v1025_v61 = vmul.f32 0.2, %v811_v42  ;;  %v1026_v1 = vmul.f32 0.2, %v862_v46  ;;  %vm993_vm10 = vcmp.ge.f32.partialorder %v811_v42, 0.0 }
 0x28d   :  { %v814_v36 = vpop.f32.mrf.mxu0  ;;  %v866_v40 = vadd.f32 %v865_v26, %v1739_v22  ;;  %v1027_v63 = vmul.f32 0.2, %v864_v33  ;;  %vm995_vm11 = vcmp.ge.f32.partialorder %v864_v33, 0.0  ;;  %v1056_v7 = vsel %vm992_vm5, %v809_v25, %v1024_v30 }
 0x28e   :  { %v867_v41 = vpop.f32.mrf.mxu1  ;;  %v815_v39 = vadd.f32 %v814_v36, %v1739_v22  ;;  %v1032_v50 = vmul.f32 0.2, %v813_v35  ;;  %vm1000_vm8 = vcmp.ge.f32.partialorder %v813_v35, 0.0  ;;  %vm994_vm12 = vcmp.ge.f32.partialorder %v862_v46, 0.0 }
 0x28f   :  { %v868_v34 = vadd.f32 %v867_v41, %v1739_v22  ;;  %v904_v43 = vpop.f32.mrf.mxu0  ;;  %v1034_v56 = vmul.f32 0.2, %v866_v40  ;;  %vm1002_vm9 = vcmp.ge.f32.partialorder %v866_v40, 0.0  ;;  %v1057_v17 = vsel %vm993_vm10, %v811_v42, %v1025_v61 }
 0x290   :  { %v957_v16 = vpop.f32.mrf.mxu1  ;;  %v1033_v51 = vmul.f32 0.2, %v815_v39  ;;  %vm1001_vm6 = vcmp.ge.f32.partialorder %v815_v39, 0.0  ;;  %v1064_v10 = vsel %vm1000_vm8, %v813_v35, %v1032_v50  ;;  %v1787_v31 = vadd.f32 %v904_v43, %v1741_v4 }
 0x291   :  { %v906_v54 = vpop.f32.mrf.mxu0  ;;  %vm1003_vm7 = vcmp.ge.f32.partialorder %v868_v34, 0.0  ;;  %v1035_v59 = vmul.f32 0.2, %v868_v34  ;;  %v1066_v11 = vsel %vm1002_vm9, %v866_v40, %v1034_v56  ;;  %v1790_v12 = vadd.f32 %v957_v16, %v1741_v4 }
 0x292   :  { %v959_v60 = vpop.f32.mrf.mxu1  ;;  %v1065_v9 = vsel %vm1001_vm6, %v815_v39, %v1033_v51  ;;  %v1793_v14 = vadd.f32 %v906_v54, %v1741_v4  ;;  %v1059_v18 = vsel %vm995_vm11, %v864_v33, %v1027_v63  ;;  %v1058_v20 = vsel %vm994_vm12, %v862_v46, %v1026_v1  ;;  %v1842_v51 = vld [vmem:[%s1956_s8] sm:$0xff]  }
 0x293   :  { %v908_v0 = vpop.f32.mrf.mxu0  ;;  %v1067_v57 = vsel %vm1003_vm7, %v868_v34, %v1035_v59  ;;  %v1796_v15 = vadd.f32 %v959_v60, %v1741_v4  ;;  %v1081_v48 = vpack.c.bf16 %v1065_v9, %v1057_v17  ;;  %v1080_v47 = vpack.c.bf16 %v1064_v10, %v1056_v7 }
 0x294   :  { %v961_v5 = vpop.f32.mrf.mxu1  ;;  %v1801_v45 = vadd.f32 %v908_v0, %v1743_v6  ;;  %v1083_v49 = vpack.c.bf16 %v1067_v57, %v1059_v18  ;;  %v1082_v58 = vpack.c.bf16 %v1066_v11, %v1058_v20  ;;  %v1810_v26 = vmul.f32 0.2, %v1787_v31 }
 0x295   :  { %v910_v8 = vpop.f32.mrf.mxu0  ;;  %v1804_v21 = vadd.f32 %v961_v5, %v1743_v6  ;;  %v1813_v32 = vmul.f32 0.2, %v1790_v12  ;;  %1122 = vmatprep.subr.bf16.mxu0 %v1081_v48  ;;  %vm981_vm13 = vcmp.ge.f32.partialorder %v1793_v14, 0.0  ;;  %v1821_v41 = vmul.f32 0.2, %v1793_v14 }
 0x296   :  { %v963_v13 = vpop.f32.mrf.mxu1  ;;  %v1807_v4 = vadd.f32 %v910_v8, %v1743_v6  ;;  %1165 = vmatprep.subr.bf16.mxu1 %v1083_v49  ;;  %v1824_v42 = vmul.f32 0.2, %v1796_v15  ;;  %1123 = vmatpush1.bf16.msra.mxu0 %v1080_v47  ;;  %vm983_vm14 = vcmp.ge.f32.partialorder %v1796_v15, 0.0  ;;  %vm988_vm15 = vcmp.ge.f32.partialorder %v1801_v45, 0.0  ;;  %v1095_v47 = vpop.permute.xlu0 %1094 }
 0x297   :  { %v914_v19 = vpop.f32.mrf.mxu0  ;;  %v1816_v35 = vadd.f32 %v963_v13, %v1743_v6  ;;  %1166 = vmatpush1.bf16.msra.mxu1 %v1082_v58  ;;  %v1073_v6 = vpack.c.bf16 %v1780_v55, %v1762_v27  ;;  %v1020_v34 = vmul.f32 0.2, %v1801_v45  ;;  %v1075_v43 = vpack.c.bf16 %v1051_v52, %v1767_v37 }
 0x298   :  { %v967_v53 = vpop.f32.mrf.mxu1  ;;  %v915_v36 = vadd.f32 %v914_v19, %v1737_v62  ;;  %vm990_vm1 = vcmp.ge.f32.partialorder %v1804_v21, 0.0  ;;  %v1022_v16 = vmul.f32 0.2, %v1804_v21  ;;  %vm989_vm0 = vcmp.ge.f32.partialorder %v1807_v4, 0.0 }
 0x299   :  { %v916_v25 = vpop.f32.mrf.mxu0  ;;  %v968_v33 = vadd.f32 %v967_v53, %v1737_v62  ;;  %1124 = vmatprep.subr.bf16.mxu0 %v1073_v6  ;;  %vm980_vm3 = vcmp.ge.f32.partialorder %v1787_v31, 0.0  ;;  %v1021_v37 = vmul.f32 0.2, %v1807_v4  ;;  %vm991_vm4 = vcmp.ge.f32.partialorder %v1816_v35, 0.0  ;;  %1167 = vmatprep.subr.bf16.mxu1 %v1075_v43 }
 0x29a   :  { %v969_v40 = vpop.f32.mrf.mxu1  ;;  %v917_v44 = vadd.f32 %v916_v25, %v1737_v62  ;;  %v1023_v54 = vmul.f32 0.2, %v1816_v35  ;;  %vm996_vm5 = vcmp.ge.f32.partialorder %v915_v36, 0.0  ;;  %1125 = vmatpush1.bf16.msra.mxu0 %v1072_v38  ;;  %v1052_v17 = vsel %vm988_vm15, %v1801_v45, %v1020_v34 }
 0x29b   :  { %v918_v39 = vpop.f32.mrf.mxu0  ;;  %v970_v27 = vadd.f32 %v969_v40, %v1737_v62  ;;  %v1028_v62 = vmul.f32 0.2, %v915_v36  ;;  %v1030_v56 = vmul.f32 0.2, %v968_v33  ;;  %1168 = vmatpush1.bf16.msra.mxu1 %v1074_v29  ;;  %vm998_vm6 = vcmp.ge.f32.partialorder %v968_v33, 0.0 }
 0x29c   :  { %v971_v46 = vpop.f32.mrf.mxu1  ;;  %v919_v30 = vadd.f32 %v918_v39, %v1739_v22  ;;  %v1029_v61 = vmul.f32 0.2, %v917_v44  ;;  %vm997_vm8 = vcmp.ge.f32.partialorder %v917_v44, 0.0  ;;  %v1053_v52 = vsel %vm989_vm0, %v1807_v4, %v1021_v37 }
 0x29d   :  { %v920_v50 = vpop.f32.mrf.mxu0  ;;  %v972_v60 = vadd.f32 %v971_v46, %v1739_v22  ;;  %v1031_v1 = vmul.f32 0.2, %v970_v27  ;;  %vm999_vm10 = vcmp.ge.f32.partialorder %v970_v27, 0.0  ;;  %1328 = vmatmul.mubr.msk.bf16.vlgmr.msra.gmra.mxu0 %vm488_vm2, %v1842_v51  ;;  %v1060_v23 = vsel %vm996_vm5, %v915_v36, %v1028_v62 }
 0x29e   :  { %v973_v55 = vpop.f32.mrf.mxu1  ;;  %v1036_v59 = vmul.f32 0.2, %v919_v30  ;;  %vm1004_vm7 = vcmp.ge.f32.partialorder %v919_v30, 0.0  ;;  %v921_v63 = vadd.f32 %v920_v50, %v1739_v22  ;;  %1329 = vmatmul.mubr.msk.bf16.vlgmr.msra.gmra.mxu1 %vm488_vm2, %v1842_v51  ;;  %1228 = vmatprep.mubr.bf16.mxu0 %v1341_v3  ;;  %v1061_v38 = vsel %vm997_vm8, %v917_v44, %v1029_v61 }
 0x29f   :  { %v974_v0 = vadd.f32 %v973_v55, %v1739_v22  ;;  %vm1006_vm9 = vcmp.ge.f32.partialorder %v972_v60, 0.0  ;;  %v1038_v5 = vmul.f32 0.2, %v972_v60  ;;  %1271 = vmatprep.mubr.bf16.mxu1 %v1341_v3  ;;  %v1063_v8 = vsel %vm999_vm10, %v970_v27, %v1031_v1 }
 0x2a0   :  { %vm1005_vm11 = vcmp.ge.f32.partialorder %v921_v63, 0.0  ;;  %v1037_v2 = vmul.f32 0.2, %v921_v63  ;;  %v1068_v24 = vsel %vm1004_vm7, %v919_v30, %v1036_v59  ;;  %v1055_v57 = vsel %vm991_vm4, %v1816_v35, %v1023_v54  ;;  %v1100_v35 = vpop.permute.xlu1 %1099 }
 0x2a1   :  { %vm1007_vm12 = vcmp.ge.f32.partialorder %v974_v0, 0.0  ;;  %v1039_v28 = vmul.f32 0.2, %v974_v0  ;;  %v1070_v22 = vsel %vm1006_vm9, %v972_v60, %v1038_v5  ;;  %v1062_v10 = vsel %vm998_vm6, %v968_v33, %v1030_v56 }
 0x2a2   :  { %v1069_v29 = vsel %vm1005_vm11, %v921_v63, %v1037_v2  ;;  %v1084_v11 = vpack.c.bf16 %v1068_v24, %v1060_v23  ;;  %v1045_v3 = vsel %vm981_vm13, %v1793_v14, %v1821_v41  ;;  %v1086_v18 = vpack.c.bf16 %v1070_v22, %v1062_v10 }
 0x2a3   :  { %v1085_v7 = vpack.c.bf16 %v1069_v29, %v1061_v38  ;;  %v1071_v9 = vsel %vm1007_vm12, %v974_v0, %v1039_v28  ;;  %v1077_v19 = vpack.c.bf16 %v1053_v52, %v1045_v3  ;;  %v1047_v20 = vsel %vm983_vm14, %v1796_v15, %v1824_v42 }
 0x2a4   :  { %v1087_v13 = vpack.c.bf16 %v1071_v9, %v1063_v8  ;;  %v1054_v48 = vsel %vm990_vm1, %v1804_v21, %v1022_v16  ;;  %v1079_v49 = vpack.c.bf16 %v1055_v57, %v1047_v20  ;;  %v1044_v14 = vsel %vm980_vm3, %v1787_v31, %v1810_v26 }
 0x2a5   :  { %1208 = vmatprep.subr.bf16.mxu0 %v1085_v7  ;;  %vm1968_vm13 = vcmp.ge.f32.partialorder %v1790_v12, 0.0  ;;  %v1076_v15 = vpack.c.bf16 %v1052_v17, %v1044_v14 }
 0x2a6   :  { %1251 = vmatprep.subr.bf16.mxu1 %v1087_v13  ;;  %1209 = vmatpush1.bf16.msra.mxu0 %v1084_v11  ;;  %v1046_v45 = vsel %vm1968_vm13, %v1790_v12, %v1813_v32 }
 0x2a7   :  { %1252 = vmatpush1.bf16.msra.mxu1 %v1086_v18  ;;  %1210 = vmatprep.subr.bf16.mxu0 %v1077_v19  ;;  %v1078_v53 = vpack.c.bf16 %v1054_v48, %v1046_v45 }
 0x2a8   :  { %1253 = vmatprep.subr.bf16.mxu1 %v1079_v49 }
 0x2aa   :  { %1211 = vmatpush1.bf16.msra.mxu0 %v1076_v15 }
 0x2ab   :  { %1254 = vmatpush1.bf16.msra.mxu1 %v1078_v53 }
 0x2ad   :  { %1330 = vmatmul.mubr.msk.bf16.vlgmr.msra.gmra.mxu0 %vm488_vm2, %v1842_v51 }
 0x2ae   :  { %1331 = vmatmul.mubr.msk.bf16.vlgmr.msra.gmra.mxu1 %vm488_vm2, %v1842_v51 }
 0x35d   :  { %v1144_v31 = vpop.f32.mrf.mxu0 }
 0x35e   :  { %v1187_v58 = vpop.f32.mrf.mxu1  ;;  %v1145_v21 = vadd.f32 %v1144_v31, %v1095_v47 }
 0x35f   :  { %v1188_v4 = vadd.f32 %v1187_v58, %v1095_v47  ;;  %v1146_v25 = vpop.f32.mrf.mxu0 }
 0x360   :  { %v1189_v26 = vpop.f32.mrf.mxu1  ;;  %1282 = vst [vmem:[%s1957_s10] sm:$0xff] %v1145_v21  ;;  %v1147_v12 = vadd.f32 %v1146_v25, %v1095_v47 }
 0x361   :  { %1284 = vst [vmem:[%s1957_s10 + $0x10] sm:$0xff] %v1188_v4  ;;  %v1190_v32 = vadd.f32 %v1189_v26, %v1095_v47  ;;  %v1148_v36 = vpop.f32.mrf.mxu0 }
 0x362   :  { %v1191_v40 = vpop.f32.mrf.mxu1  ;;  %1283 = vst [vmem:[%s1957_s10 + $0x8] sm:$0xff] %v1147_v12  ;;  %v1149_v41 = vadd.f32 %v1148_v36, %v1100_v35 }
 0x363   :  { %1285 = vst [vmem:[%s1957_s10 + $0x18] sm:$0xff] %v1190_v32  ;;  %v1192_v42 = vadd.f32 %v1191_v40, %v1100_v35  ;;  %v1150_v33 = vpop.f32.mrf.mxu0 }
 0x364   :  { %v1193_v6 = vpop.f32.mrf.mxu1  ;;  %1290 = vst [vmem:[%s1957_s10 + $0x40] sm:$0xff] %v1149_v41  ;;  %v1151_v39 = vadd.f32 %v1150_v33, %v1100_v35 }
 0x365   :  { %1292 = vst [vmem:[%s1957_s10 + $0x50] sm:$0xff] %v1192_v42  ;;  %v1194_v34 = vadd.f32 %v1193_v6, %v1100_v35 }
 0x366   :  { %1291 = vst [vmem:[%s1957_s10 + $0x48] sm:$0xff] %v1151_v39 }
 0x367   :  { %1293 = vst [vmem:[%s1957_s10 + $0x58] sm:$0xff] %v1194_v34 }
 0x36d   :  { %v1230_v43 = vpop.f32.mrf.mxu0 }
 0x36e   :  { %v1231_v44 = vadd.f32 %v1230_v43, %v1095_v47  ;;  %v1273_v46 = vpop.f32.mrf.mxu1 }
 0x36f   :  { %v1274_v16 = vadd.f32 %v1273_v46, %v1095_v47  ;;  %v1232_v27 = vpop.f32.mrf.mxu0 }
 0x370   :  { %1286 = vst [vmem:[%s1957_s10 + $0x20] sm:$0xff] %v1231_v44  ;;  %v1233_v30 = vadd.f32 %v1232_v27, %v1095_v47  ;;  %v1275_v50 = vpop.f32.mrf.mxu1 }
 0x371   :  { %1288 = vst [vmem:[%s1957_s10 + $0x30] sm:$0xff] %v1274_v16  ;;  %v1276_v51 = vadd.f32 %v1275_v50, %v1095_v47  ;;  %v1234_v37 = vpop.f32.mrf.mxu0 }
 0x372   :  { %1287 = vst [vmem:[%s1957_s10 + $0x28] sm:$0xff] %v1233_v30  ;;  %v1235_v54 = vadd.f32 %v1234_v37, %v1100_v35  ;;  %v1277_v55 = vpop.f32.mrf.mxu1 }
 0x373   :  { %1289 = vst [vmem:[%s1957_s10 + $0x38] sm:$0xff] %v1276_v51  ;;  %v1278_v62 = vadd.f32 %v1277_v55, %v1100_v35  ;;  %v1236_v56 = vpop.f32.mrf.mxu0 }
 0x374   :  { %1294 = vst [vmem:[%s1957_s10 + $0x60] sm:$0xff] %v1235_v54  ;;  %v1237_v59 = vadd.f32 %v1236_v56, %v1100_v35  ;;  %v1279_v60 = vpop.f32.mrf.mxu1 }
 0x375   :  { %1296 = vst [vmem:[%s1957_s10 + $0x70] sm:$0xff] %v1278_v62  ;;  %v1280_v61 = vadd.f32 %v1279_v60, %v1100_v35 }
 0x376   :  { %1295 = vst [vmem:[%s1957_s10 + $0x68] sm:$0xff] %v1237_v59 }
 0x377   :  { %1297 = vst [vmem:[%s1957_s10 + $0x78] sm:$0xff] %v1280_v61 }

// kernel: mmes_forward.3
= control target key start
LH: loop header
LB: loop body
LE: loop exit
PB: predicated region body
PF: predicated region fallthrough
CT: control target
= control target key end

     0   :  { %vm28_vm0 = vcmask 1043456   ;;  %v138_v1 = vmov 0.0   ;;  %v139_v2 = vmov 0   ;;  %vm24_vm1 = vcmask 31744   ;;  %s172_s2 = inlined_call_operand.vmem [shape: f32[4,256], index: 2, kind: input, shape index: {}]   ;;  %s173_s0 = inlined_call_operand.vmem [shape: f32[4,4], index: 0, kind: input, shape index: {}]   ;;  %s174_s1 = inlined_call_operand.vmem [shape: f32[4,1], index: 1, kind: input, shape index: {}]   ;;  %s175_s3 = inlined_call_operand.vmem [shape: f32[4,256], index: 3, kind: output, shape index: {}]  }
   0x1   :  { %v15_v0 = vld [vmem:[%s172_s2] sm:$0xff]  ;;  %97 = vmatprep.mubr.f32.mxu0 %v138_v1  ;;  %128 = vset.pattern.permute.xlu0 %v139_v2 }
   0x2   :  { %v16_v3 = vld [vmem:[%s174_s1] sm:$0xf]  ;;  %v23_v4 = vcombine.high %v15_v0, %v15_v0 }
   0x3   :  { %19 = vperm.xlu0 %128, %v16_v3   ;;  %v14_v5 = vld [vmem:[%s173_s0] sm:$0xf] }
   0x4   :  { %123 = vmatprep.subr.msk.mxu0 %vm28_vm0, %v23_v4 }
   0x5   :  { %124 = vmatpush1.msk.msra.mxu0 %vm28_vm0, %v15_v0 }
   0x6   :  { %125 = vmatmul.mubr.msk.f32.vlgmr.msra.gmra.mxu0 %vm24_vm1, %v14_v5 }
  0x7e   :  { %v20_v6 = vpop.permute.xlu0 %19 }
  0xc6   :  { %v99_v7 = vpop.f32.mrf.mxu0 }
  0xc7   :  { %v100_v8 = vadd.f32 %v99_v7, %v20_v6 }
  0xc8   :  { %v101_v9 = vpop.f32.mrf.mxu0 }
  0xc9   :  { %v104_v10 = vsub.f32 0.0, %v100_v8  ;;  %v102_v11 = vadd.f32 %v101_v9, %v20_v6 }
  0xcb   :  { %v106_v12 = vmul.f32 1.442695, %v104_v10  ;;  %v105_v13 = vsub.f32 0.0, %v102_v11 }
  0xcd   :  { %130 = vpow2.f32 %v106_v12  ;;  %v108_v14 = vmul.f32 1.442695, %v105_v13 }
  0xcf   :  { %132 = vpow2.f32 %v108_v14 }
  0xda   :  { %v131_v15 = vpop.eup %130 }
  0xdb   :  { %v110_v16 = vadd.f32 1.0, %v131_v15 }
  0xdc   :  { %v133_v17 = vpop.eup %132 }
  0xdd   :  { %v111_v18 = vadd.f32 1.0, %v133_v17  ;;  %134 = vrcp.f32 %v110_v16 }
  0xdf   :  { %136 = vrcp.f32 %v111_v18 }
  0xea   :  { %v135_v19 = vpop.eup %134 }
  0xec   :  { %v137_v20 = vpop.eup %136 }
  0xed   :  { %v116_v21 = vcombine.low %v135_v19, %v137_v20 }
  0xef   :  { %118 = vst [vmem:[%s175_s3] sm:$0xff] %v116_v21 }

</bundles_post_ra>
